<compile_context>
chip_gen: v6e
topology: v6e:2x2x1
jax: 0.10.0
libtpu: 0.0.40
codegen_flags: <defaults>
</compile_context>

<pallas_src>
import jax
import jax.numpy as jnp
from jax.experimental import pallas as pl
from jax.experimental.pallas import tpu as pltpu

K_HEADS = 5  # multiheadAttentionLayer default k=5 (channelNum default 6 forces C == 6)
BN_EPS = 1e-5


def _softmax_last(z):
    m = jnp.max(z, axis=-1, keepdims=True)
    e = jnp.exp(z - m)
    return e / jnp.sum(e, axis=-1, keepdims=True)


def _batchnorm1d(z, gamma, beta):
    # z: (B, C, L); normalize per channel over (B, L) with batch statistics.
    n = z.shape[0] * z.shape[2]
    s = jnp.sum(jnp.sum(z, axis=2, keepdims=True), axis=0, keepdims=True)      # (1,C,1)
    mean = s / n
    d = z - mean
    var = jnp.sum(jnp.sum(d * d, axis=2, keepdims=True), axis=0, keepdims=True) / n
    inv = jax.lax.rsqrt(var + BN_EPS)
    return (d * inv) * gamma + beta                                             # gamma/beta: (C,1)


def mhagcn_kernel(x_ref, w1_ref, b1_ref, w2_ref, b2_ref, wexp_ref, be_ref,
                  wg1_ref, bg1_ref, wg2_ref, bg2_ref, prelu_ref,
                  bn1_g_ref, bn1_b_ref, bn2_g_ref, bn2_b_ref, out_ref):
    x = x_ref[...]                                   # (B, C, Lin)
    B, C, _ = x.shape
    M = w1_ref.shape[0] // K_HEADS                   # per-head middle length

    # ---- fused Q/K projections for all heads: two MXU matmuls ----
    a1 = jnp.einsum('bcl,ml->bcm', x, w1_ref[...],
                    preferred_element_type=jnp.float32) + b1_ref[...]           # (B,C,K*M)
    a2 = jnp.einsum('bcl,ml->bcm', x, w2_ref[...],
                    preferred_element_type=jnp.float32) + b2_ref[...]           # (B,C,K*M)

    # ---- per-head score matmuls, stacked along the leading axis (g = head*B + b) ----
    scores = []
    for k in range(K_HEADS):
        a1k = a1[:, :, k * M:(k + 1) * M]            # (B,C,M) static slice
        a2k = a2[:, :, k * M:(k + 1) * M]
        scores.append(jnp.einsum('bcm,bdm->bcd', a1k, a2k,
                                 preferred_element_type=jnp.float32))           # (B,C,C)
    s_all = jnp.concatenate(scores, axis=0)          # (K*B, C, C), leading-dim stack

    # ---- one fused softmax over all heads ----
    p_all = _softmax_last(s_all)                     # (K*B, C, C)

    # ---- linearExchange: one batched matmul against per-(head,batch) We blocks ----
    exch_parts = jnp.einsum('gcd,gjd->gcj', p_all, wexp_ref[...],
                            preferred_element_type=jnp.float32)                 # (K*B, C, C)
    exch = exch_parts[0:B]
    for k in range(1, K_HEADS):
        exch = exch + exch_parts[k * B:(k + 1) * B]  # sum over heads -> (B, C, C)
    attn = _softmax_last(exch + be_ref[...])         # (B, C, C)

    # ---- GraphConvolution 1 + PReLU + BatchNorm1d ----
    support1 = jnp.einsum('bcl,lh->bch', x, wg1_ref[...],
                          preferred_element_type=jnp.float32)
    h1 = jnp.einsum('bcd,bdh->bch', attn, support1,
                    preferred_element_type=jnp.float32) + bg1_ref[...]
    a = prelu_ref[0]                                 # scalar slope from SMEM
    h1 = jnp.where(h1 >= 0, h1, a * h1)
    h1 = _batchnorm1d(h1, bn1_g_ref[...], bn1_b_ref[...])

    # ---- GraphConvolution 2 + BatchNorm1d ----
    support2 = jnp.einsum('bch,ho->bco', h1, wg2_ref[...],
                          preferred_element_type=jnp.float32)
    h2 = jnp.einsum('bcd,bdo->bco', attn, support2,
                    preferred_element_type=jnp.float32) + bg2_ref[...]
    out_ref[...] = _batchnorm1d(h2, bn2_g_ref[...], bn2_b_ref[...])


def mhagcn_pallas(x, params):
    (W1, b1, W2, b2, We, be, Wg1, bg1, Wg2, bg2,
     prelu_a, bn1_g, bn1_b, bn2_g, bn2_b) = params
    B, C, Lin = x.shape
    K, M, _ = W1.shape
    H = Wg1.shape[1]
    Lout = Wg2.shape[1]

    # Host-side repacking (free): stacked projection weights + per-head exchange blocks.
    W1f = W1.reshape(K * M, Lin)                       # row k*M+m = W1[k, m, :]
    b1f = b1.reshape(1, K * M)
    W2f = W2.reshape(K * M, Lin)
    b2f = b2.reshape(1, K * M)
    We_r = We.reshape(C, K, C).transpose(1, 0, 2)      # (K, C, C): We_r[k] = We[:, kC:(k+1)C]
    We_exp = jnp.repeat(We_r, B, axis=0)               # (K*B, C, C), index g = k*B + b
    prelu_s = prelu_a.reshape(1)                       # scalar -> SMEM

    # Advisory cost hint (kernel is tiny & latency bound; helps XLA scheduling).
    flops = int(2 * (2 * B * C * Lin * K * M           # fused projections
                     + K * B * C * C * M               # per-head scores
                     + K * B * C * C * C               # exchange
                     + B * C * Lin * H + B * C * C * H
                     + B * C * H * Lout + B * C * C * Lout))
    trans = int(K * B * C * C + B * C * C + 4 * C)
    args = (x, W1f, b1f, W2f, b2f, We_exp, be, Wg1, bg1, Wg2, bg2,
            prelu_s, bn1_g, bn1_b, bn2_g, bn2_b)
    bytes_accessed = int(sum(int(a.size) * 4 for a in args) + B * C * Lout * 4)

    vmem = pltpu.MemorySpace.VMEM
    smem = pltpu.MemorySpace.SMEM
    in_specs = ([pl.BlockSpec(memory_space=vmem)] * 11
                + [pl.BlockSpec(memory_space=smem)]       # prelu slope scalar
                + [pl.BlockSpec(memory_space=vmem)] * 4)

    return pl.pallas_call(
        mhagcn_kernel,
        out_shape=jax.ShapeDtypeStruct((B, C, Lout), jnp.float32),
        in_specs=in_specs,
        out_specs=pl.BlockSpec(memory_space=vmem),
        cost_estimate=pl.CostEstimate(flops=flops, transcendentals=trans,
                                      bytes_accessed=bytes_accessed),
    )(*args)


def mhagcn_ref(x, params):
    """Plain-JAX reference mirroring the PyTorch forward (eval dropout, batch-stat BN)."""
    (W1, b1, W2, b2, We, be, Wg1, bg1, Wg2, bg2,
     prelu_a, bn1_g, bn1_b, bn2_g, bn2_b) = params
    heads = []
    for i in range(K_HEADS):
        a1 = x @ W1[i].T + b1[i]
        a2 = x @ W2[i].T + b2[i]
        heads.append(jax.nn.softmax(jnp.einsum('bcm,bdm->bcd', a1, a2), axis=-1))
    cat = jnp.concatenate(heads, axis=2)
    attn = jax.nn.softmax(cat @ We.T + be, axis=-1)

    def bn(z, g, b):
        mean = z.mean(axis=(0, 2), keepdims=True)
        var = ((z - mean) ** 2).mean(axis=(0, 2), keepdims=True)
        return (z - mean) / jnp.sqrt(var + BN_EPS) * g + b

    h1 = jnp.einsum('bcd,bdh->bch', attn, x @ Wg1) + bg1
    h1 = jnp.where(h1 >= 0, h1, prelu_a[0, 0] * h1)
    h1 = bn(h1, bn1_g, bn1_b)
    h2 = jnp.einsum('bcd,bdo->bco', attn, h1 @ Wg2) + bg2
    return bn(h2, bn2_g, bn2_b)


if __name__ == "__main__":
    # Shapes implied by the module: channelNum must equal 6 (multiheadAttentionLayer default).
    B, C, Lin, H, Lout = 2, 6, 16, 32, 8
    M = H  # dataMiddleLength = dataHiddenLength in MHAGCN

    key = jax.random.PRNGKey(0)
    ks = jax.random.split(key, 9)

    bound_l = 1.0 / (Lin ** 0.5)            # nn.Linear default init range
    W1 = jax.random.uniform(ks[0], (K_HEADS, M, Lin), jnp.float32, -bound_l, bound_l)
    b1 = jax.random.uniform(ks[1], (K_HEADS, 1, M), jnp.float32, -bound_l, bound_l)
    W2 = jax.random.uniform(ks[2], (K_HEADS, M, Lin), jnp.float32, -bound_l, bound_l)
    b2 = jax.random.uniform(ks[3], (K_HEADS, 1, M), jnp.float32, -bound_l, bound_l)

    bound_e = 1.0 / ((K_HEADS * C) ** 0.5)
    We = jax.random.uniform(ks[4], (C, K_HEADS * C), jnp.float32, -bound_e, bound_e)
    be = jax.random.uniform(ks[5], (1, C), jnp.float32, -bound_e, bound_e)

    xb1 = (6.0 / (Lin + H)) ** 0.5          # xavier_uniform for GCN weights
    Wg1 = jax.random.uniform(ks[6], (Lin, H), jnp.float32, -xb1, xb1)
    bg1 = jnp.zeros((1, H), jnp.float32)
    xb2 = (6.0 / (H + Lout)) ** 0.5
    Wg2 = jax.random.uniform(ks[7], (H, Lout), jnp.float32, -xb2, xb2)
    bg2 = jnp.zeros((1, Lout), jnp.float32)

    prelu_a = jnp.full((1, 1), 0.25, jnp.float32)
    bn1_g = jnp.ones((C, 1), jnp.float32)
    bn1_b = jnp.zeros((C, 1), jnp.float32)
    bn2_g = jnp.ones((C, 1), jnp.float32)
    bn2_b = jnp.zeros((C, 1), jnp.float32)

    params = (W1, b1, W2, b2, We, be, Wg1, bg1, Wg2, bg2,
              prelu_a, bn1_g, bn1_b, bn2_g, bn2_b)

    x = jax.random.normal(ks[8], (B, C, Lin), jnp.float32)

    out = mhagcn_pallas(x, params)
    out = jax.block_until_ready(out)

    ref = mhagcn_ref(x, params)
    assert out.shape == (B, C, Lout)
    assert bool(jnp.allclose(out, ref, rtol=1e-3, atol=1e-3)), "Pallas kernel mismatch vs reference"

    print("KERNEL_OK")
</pallas_src>

<mosaic_0001>
module attributes {stable_mosaic.version = 11 : i64} {
  func.func @mhagcn_kernel(%arg0: memref<2x6x16xf32, #tpu.memory_space<vmem>>, %arg1: memref<160x16xf32, #tpu.memory_space<vmem>>, %arg2: memref<1x160xf32, #tpu.memory_space<vmem>>, %arg3: memref<160x16xf32, #tpu.memory_space<vmem>>, %arg4: memref<1x160xf32, #tpu.memory_space<vmem>>, %arg5: memref<10x6x6xf32, #tpu.memory_space<vmem>>, %arg6: memref<1x6xf32, #tpu.memory_space<vmem>>, %arg7: memref<16x32xf32, #tpu.memory_space<vmem>>, %arg8: memref<1x32xf32, #tpu.memory_space<vmem>>, %arg9: memref<32x8xf32, #tpu.memory_space<vmem>>, %arg10: memref<1x8xf32, #tpu.memory_space<vmem>>, %arg11: memref<1xf32, #tpu.memory_space<smem>>, %arg12: memref<6x1xf32, #tpu.memory_space<vmem>>, %arg13: memref<6x1xf32, #tpu.memory_space<vmem>>, %arg14: memref<6x1xf32, #tpu.memory_space<vmem>>, %arg15: memref<6x1xf32, #tpu.memory_space<vmem>>, %arg16: memref<2x6x8xf32, #tpu.memory_space<vmem>>) attributes {dimension_semantics = [], scalar_prefetch = 0 : i64, scratch_operands = 0 : i64, tpu.core_type = #tpu.core_type<tc>} {
    %c0 = arith.constant 0 : index
    %c0_0 = arith.constant 0 : index
    %c0_1 = arith.constant 0 : index
    %0 = vector.load %arg0[%c0, %c0_0, %c0_1] : memref<2x6x16xf32, #tpu.memory_space<vmem>>, vector<2x6x16xf32>
    %c0_2 = arith.constant 0 : index
    %c0_3 = arith.constant 0 : index
    %1 = vector.load %arg1[%c0_2, %c0_3] : memref<160x16xf32, #tpu.memory_space<vmem>>, vector<160x16xf32>
    "tpu.trace_start"() <{level = 10 : i32, message = "bcl,ml->bcm"}> : () -> ()
    %cst = arith.constant dense<0.000000e+00> : vector<2x6x160xf32>
    %2 = tpu.matmul %0, %1, %cst {dimension_numbers = #tpu.dot_dimension_numbers<[2], [1], [0, 1], [0], [0, 0, 0, 1, 1, 0], [], []>} : vector<2x6x16xf32>, vector<160x16xf32>, vector<2x6x160xf32> -> vector<2x6x160xf32>
    "tpu.trace_stop"() : () -> ()
    %c0_4 = arith.constant 0 : index
    %c0_5 = arith.constant 0 : index
    %3 = vector.load %arg2[%c0_4, %c0_5] : memref<1x160xf32, #tpu.memory_space<vmem>>, vector<1x160xf32>
    %4 = vector.shape_cast %3 : vector<1x160xf32> to vector<1x1x160xf32>
    %5 = vector.broadcast %4 : vector<1x1x160xf32> to vector<2x6x160xf32>
    %6 = arith.addf %2, %5 : vector<2x6x160xf32>
    %c0_6 = arith.constant 0 : index
    %c0_7 = arith.constant 0 : index
    %7 = vector.load %arg3[%c0_6, %c0_7] : memref<160x16xf32, #tpu.memory_space<vmem>>, vector<160x16xf32>
    "tpu.trace_start"() <{level = 10 : i32, message = "bcl,ml->bcm"}> : () -> ()
    %cst_8 = arith.constant dense<0.000000e+00> : vector<2x6x160xf32>
    %8 = tpu.matmul %0, %7, %cst_8 {dimension_numbers = #tpu.dot_dimension_numbers<[2], [1], [0, 1], [0], [0, 0, 0, 1, 1, 0], [], []>} : vector<2x6x16xf32>, vector<160x16xf32>, vector<2x6x160xf32> -> vector<2x6x160xf32>
    "tpu.trace_stop"() : () -> ()
    %c0_9 = arith.constant 0 : index
    %c0_10 = arith.constant 0 : index
    %9 = vector.load %arg4[%c0_9, %c0_10] : memref<1x160xf32, #tpu.memory_space<vmem>>, vector<1x160xf32>
    %10 = vector.shape_cast %9 : vector<1x160xf32> to vector<1x1x160xf32>
    %11 = vector.broadcast %10 : vector<1x1x160xf32> to vector<2x6x160xf32>
    %12 = arith.addf %8, %11 : vector<2x6x160xf32>
    %13 = vector.extract_strided_slice %6 {offsets = [0, 0, 0], sizes = [2, 6, 32], strides = [1, 1, 1]} : vector<2x6x160xf32> to vector<2x6x32xf32>
    %14 = vector.extract_strided_slice %12 {offsets = [0, 0, 0], sizes = [2, 6, 32], strides = [1, 1, 1]} : vector<2x6x160xf32> to vector<2x6x32xf32>
    "tpu.trace_start"() <{level = 10 : i32, message = "bcm,bdm->bcd"}> : () -> ()
    %cst_11 = arith.constant dense<0.000000e+00> : vector<2x6x6xf32>
    %15 = tpu.matmul %13, %14, %cst_11 {dimension_numbers = #tpu.dot_dimension_numbers<[2], [2], [1], [1], [0, 0, 0, 1, 1, 1], [0], [0]>} : vector<2x6x32xf32>, vector<2x6x32xf32>, vector<2x6x6xf32> -> vector<2x6x6xf32>
    "tpu.trace_stop"() : () -> ()
    %16 = vector.extract_strided_slice %6 {offsets = [0, 0, 32], sizes = [2, 6, 32], strides = [1, 1, 1]} : vector<2x6x160xf32> to vector<2x6x32xf32>
    %17 = vector.extract_strided_slice %12 {offsets = [0, 0, 32], sizes = [2, 6, 32], strides = [1, 1, 1]} : vector<2x6x160xf32> to vector<2x6x32xf32>
    "tpu.trace_start"() <{level = 10 : i32, message = "bcm,bdm->bcd"}> : () -> ()
    %cst_12 = arith.constant dense<0.000000e+00> : vector<2x6x6xf32>
    %18 = tpu.matmul %16, %17, %cst_12 {dimension_numbers = #tpu.dot_dimension_numbers<[2], [2], [1], [1], [0, 0, 0, 1, 1, 1], [0], [0]>} : vector<2x6x32xf32>, vector<2x6x32xf32>, vector<2x6x6xf32> -> vector<2x6x6xf32>
    "tpu.trace_stop"() : () -> ()
    %19 = vector.extract_strided_slice %6 {offsets = [0, 0, 64], sizes = [2, 6, 32], strides = [1, 1, 1]} : vector<2x6x160xf32> to vector<2x6x32xf32>
    %20 = vector.extract_strided_slice %12 {offsets = [0, 0, 64], sizes = [2, 6, 32], strides = [1, 1, 1]} : vector<2x6x160xf32> to vector<2x6x32xf32>
    "tpu.trace_start"() <{level = 10 : i32, message = "bcm,bdm->bcd"}> : () -> ()
    %cst_13 = arith.constant dense<0.000000e+00> : vector<2x6x6xf32>
    %21 = tpu.matmul %19, %20, %cst_13 {dimension_numbers = #tpu.dot_dimension_numbers<[2], [2], [1], [1], [0, 0, 0, 1, 1, 1], [0], [0]>} : vector<2x6x32xf32>, vector<2x6x32xf32>, vector<2x6x6xf32> -> vector<2x6x6xf32>
    "tpu.trace_stop"() : () -> ()
    %22 = vector.extract_strided_slice %6 {offsets = [0, 0, 96], sizes = [2, 6, 32], strides = [1, 1, 1]} : vector<2x6x160xf32> to vector<2x6x32xf32>
    %23 = vector.extract_strided_slice %12 {offsets = [0, 0, 96], sizes = [2, 6, 32], strides = [1, 1, 1]} : vector<2x6x160xf32> to vector<2x6x32xf32>
    "tpu.trace_start"() <{level = 10 : i32, message = "bcm,bdm->bcd"}> : () -> ()
    %cst_14 = arith.constant dense<0.000000e+00> : vector<2x6x6xf32>
    %24 = tpu.matmul %22, %23, %cst_14 {dimension_numbers = #tpu.dot_dimension_numbers<[2], [2], [1], [1], [0, 0, 0, 1, 1, 1], [0], [0]>} : vector<2x6x32xf32>, vector<2x6x32xf32>, vector<2x6x6xf32> -> vector<2x6x6xf32>
    "tpu.trace_stop"() : () -> ()
    %25 = vector.extract_strided_slice %6 {offsets = [0, 0, 128], sizes = [2, 6, 32], strides = [1, 1, 1]} : vector<2x6x160xf32> to vector<2x6x32xf32>
    %26 = vector.extract_strided_slice %12 {offsets = [0, 0, 128], sizes = [2, 6, 32], strides = [1, 1, 1]} : vector<2x6x160xf32> to vector<2x6x32xf32>
    "tpu.trace_start"() <{level = 10 : i32, message = "bcm,bdm->bcd"}> : () -> ()
    %cst_15 = arith.constant dense<0.000000e+00> : vector<2x6x6xf32>
    %27 = tpu.matmul %25, %26, %cst_15 {dimension_numbers = #tpu.dot_dimension_numbers<[2], [2], [1], [1], [0, 0, 0, 1, 1, 1], [0], [0]>} : vector<2x6x32xf32>, vector<2x6x32xf32>, vector<2x6x6xf32> -> vector<2x6x6xf32>
    "tpu.trace_stop"() : () -> ()
    %28 = tpu.concatenate %15, %18, %21, %24, %27 in 0 : vector<2x6x6xf32>, vector<2x6x6xf32>, vector<2x6x6xf32>, vector<2x6x6xf32>, vector<2x6x6xf32> -> vector<10x6x6xf32>
    %cst_16 = arith.constant dense<0xFF800000> : vector<10x6xf32>
    %29 = vector.multi_reduction <maximumf>, %28, %cst_16 [2] : vector<10x6x6xf32> to vector<10x6xf32>
    %30 = vector.shape_cast %29 : vector<10x6xf32> to vector<10x6x1xf32>
    %31 = vector.broadcast %30 : vector<10x6x1xf32> to vector<10x6x6xf32>
    %32 = arith.subf %28, %31 : vector<10x6x6xf32>
    %33 = math.exp %32 : vector<10x6x6xf32>
    %cst_17 = arith.constant dense<0.000000e+00> : vector<10x6xf32>
    %34 = vector.multi_reduction <add>, %33, %cst_17 [2] : vector<10x6x6xf32> to vector<10x6xf32>
    %35 = vector.shape_cast %34 : vector<10x6xf32> to vector<10x6x1xf32>
    %36 = vector.broadcast %35 : vector<10x6x1xf32> to vector<10x6x6xf32>
    %37 = arith.divf %33, %36 : vector<10x6x6xf32>
    %c0_18 = arith.constant 0 : index
    %c0_19 = arith.constant 0 : index
    %c0_20 = arith.constant 0 : index
    %38 = vector.load %arg5[%c0_18, %c0_19, %c0_20] : memref<10x6x6xf32, #tpu.memory_space<vmem>>, vector<10x6x6xf32>
    "tpu.trace_start"() <{level = 10 : i32, message = "gcd,gjd->gcj"}> : () -> ()
    %cst_21 = arith.constant dense<0.000000e+00> : vector<10x6x6xf32>
    %39 = tpu.matmul %37, %38, %cst_21 {dimension_numbers = #tpu.dot_dimension_numbers<[2], [2], [1], [1], [0, 0, 0, 1, 1, 1], [0], [0]>} : vector<10x6x6xf32>, vector<10x6x6xf32>, vector<10x6x6xf32> -> vector<10x6x6xf32>
    "tpu.trace_stop"() : () -> ()
    %40 = vector.extract_strided_slice %39 {offsets = [0, 0, 0], sizes = [2, 6, 6], strides = [1, 1, 1]} : vector<10x6x6xf32> to vector<2x6x6xf32>
    %41 = vector.extract_strided_slice %39 {offsets = [2, 0, 0], sizes = [2, 6, 6], strides = [1, 1, 1]} : vector<10x6x6xf32> to vector<2x6x6xf32>
    %42 = arith.addf %40, %41 : vector<2x6x6xf32>
    %43 = vector.extract_strided_slice %39 {offsets = [4, 0, 0], sizes = [2, 6, 6], strides = [1, 1, 1]} : vector<10x6x6xf32> to vector<2x6x6xf32>
    %44 = arith.addf %42, %43 : vector<2x6x6xf32>
    %45 = vector.extract_strided_slice %39 {offsets = [6, 0, 0], sizes = [2, 6, 6], strides = [1, 1, 1]} : vector<10x6x6xf32> to vector<2x6x6xf32>
    %46 = arith.addf %44, %45 : vector<2x6x6xf32>
    %47 = vector.extract_strided_slice %39 {offsets = [8, 0, 0], sizes = [2, 6, 6], strides = [1, 1, 1]} : vector<10x6x6xf32> to vector<2x6x6xf32>
    %48 = arith.addf %46, %47 : vector<2x6x6xf32>
    %c0_22 = arith.constant 0 : index
    %c0_23 = arith.constant 0 : index
    %49 = vector.load %arg6[%c0_22, %c0_23] : memref<1x6xf32, #tpu.memory_space<vmem>>, vector<1x6xf32>
    %50 = vector.shape_cast %49 : vector<1x6xf32> to vector<1x1x6xf32>
    %51 = vector.broadcast %50 : vector<1x1x6xf32> to vector<2x6x6xf32>
    %52 = arith.addf %48, %51 : vector<2x6x6xf32>
    %cst_24 = arith.constant dense<0xFF800000> : vector<2x6xf32>
    %53 = vector.multi_reduction <maximumf>, %52, %cst_24 [2] : vector<2x6x6xf32> to vector<2x6xf32>
    %54 = vector.shape_cast %53 : vector<2x6xf32> to vector<2x6x1xf32>
    %55 = vector.broadcast %54 : vector<2x6x1xf32> to vector<2x6x6xf32>
    %56 = arith.subf %52, %55 : vector<2x6x6xf32>
    %57 = math.exp %56 : vector<2x6x6xf32>
    %cst_25 = arith.constant dense<0.000000e+00> : vector<2x6xf32>
    %58 = vector.multi_reduction <add>, %57, %cst_25 [2] : vector<2x6x6xf32> to vector<2x6xf32>
    %59 = vector.shape_cast %58 : vector<2x6xf32> to vector<2x6x1xf32>
    %60 = vector.broadcast %59 : vector<2x6x1xf32> to vector<2x6x6xf32>
    %61 = arith.divf %57, %60 : vector<2x6x6xf32>
    %c0_26 = arith.constant 0 : index
    %c0_27 = arith.constant 0 : index
    %62 = vector.load %arg7[%c0_26, %c0_27] : memref<16x32xf32, #tpu.memory_space<vmem>>, vector<16x32xf32>
    "tpu.trace_start"() <{level = 10 : i32, message = "bcl,lh->bch"}> : () -> ()
    %cst_28 = arith.constant dense<0.000000e+00> : vector<2x6x32xf32>
    %63 = tpu.matmul %0, %62, %cst_28 {dimension_numbers = #tpu.dot_dimension_numbers<[2], [0], [0, 1], [1], [0, 0, 0, 1, 1, 1], [], []>} : vector<2x6x16xf32>, vector<16x32xf32>, vector<2x6x32xf32> -> vector<2x6x32xf32>
    "tpu.trace_stop"() : () -> ()
    "tpu.trace_start"() <{level = 10 : i32, message = "bcd,bdh->bch"}> : () -> ()
    %cst_29 = arith.constant dense<0.000000e+00> : vector<2x6x32xf32>
    %64 = tpu.matmul %61, %63, %cst_29 {dimension_numbers = #tpu.dot_dimension_numbers<[2], [1], [1], [2], [0, 0, 0, 1, 1, 2], [0], [0]>} : vector<2x6x6xf32>, vector<2x6x32xf32>, vector<2x6x32xf32> -> vector<2x6x32xf32>
    "tpu.trace_stop"() : () -> ()
    %c0_30 = arith.constant 0 : index
    %c0_31 = arith.constant 0 : index
    %65 = vector.load %arg8[%c0_30, %c0_31] : memref<1x32xf32, #tpu.memory_space<vmem>>, vector<1x32xf32>
    %66 = vector.shape_cast %65 : vector<1x32xf32> to vector<1x1x32xf32>
    %67 = vector.broadcast %66 : vector<1x1x32xf32> to vector<2x6x32xf32>
    %68 = arith.addf %64, %67 : vector<2x6x32xf32>
    %c0_32 = arith.constant 0 : index
    %69 = memref.load %arg11[%c0_32] : memref<1xf32, #tpu.memory_space<smem>>
    %cst_33 = arith.constant 0.000000e+00 : f32
    %70 = vector.broadcast %cst_33 : f32 to vector<2x6x32xf32>
    %71 = arith.cmpf oge, %68, %70 : vector<2x6x32xf32>
    %72 = vector.broadcast %69 : f32 to vector<2x6x32xf32>
    %73 = arith.mulf %72, %68 : vector<2x6x32xf32>
    %74 = arith.select %71, %68, %73 : vector<2x6x32xi1>, vector<2x6x32xf32>
    %c0_34 = arith.constant 0 : index
    %c0_35 = arith.constant 0 : index
    %75 = vector.load %arg12[%c0_34, %c0_35] : memref<6x1xf32, #tpu.memory_space<vmem>>, vector<6x1xf32>
    %c0_36 = arith.constant 0 : index
    %c0_37 = arith.constant 0 : index
    %76 = vector.load %arg13[%c0_36, %c0_37] : memref<6x1xf32, #tpu.memory_space<vmem>>, vector<6x1xf32>
    %cst_38 = arith.constant dense<0.000000e+00> : vector<2x6xf32>
    %77 = vector.multi_reduction <add>, %74, %cst_38 [2] : vector<2x6x32xf32> to vector<2x6xf32>
    %78 = vector.shape_cast %77 : vector<2x6xf32> to vector<2x6x1xf32>
    %cst_39 = arith.constant dense<0.000000e+00> : vector<6x1xf32>
    %79 = vector.multi_reduction <add>, %78, %cst_39 [0] : vector<2x6x1xf32> to vector<6x1xf32>
    %80 = vector.shape_cast %79 : vector<6x1xf32> to vector<1x6x1xf32>
    %cst_40 = arith.constant 6.400000e+01 : f32
    %81 = vector.broadcast %cst_40 : f32 to vector<1x6x1xf32>
    %82 = arith.divf %80, %81 : vector<1x6x1xf32>
    %83 = vector.broadcast %82 : vector<1x6x1xf32> to vector<2x6x32xf32>
    %84 = arith.subf %74, %83 : vector<2x6x32xf32>
    %85 = arith.mulf %84, %84 : vector<2x6x32xf32>
    %cst_41 = arith.constant dense<0.000000e+00> : vector<2x6xf32>
    %86 = vector.multi_reduction <add>, %85, %cst_41 [2] : vector<2x6x32xf32> to vector<2x6xf32>
    %87 = vector.shape_cast %86 : vector<2x6xf32> to vector<2x6x1xf32>
    %cst_42 = arith.constant dense<0.000000e+00> : vector<6x1xf32>
    %88 = vector.multi_reduction <add>, %87, %cst_42 [0] : vector<2x6x1xf32> to vector<6x1xf32>
    %89 = vector.shape_cast %88 : vector<6x1xf32> to vector<1x6x1xf32>
    %cst_43 = arith.constant 6.400000e+01 : f32
    %90 = vector.broadcast %cst_43 : f32 to vector<1x6x1xf32>
    %91 = arith.divf %89, %90 : vector<1x6x1xf32>
    %cst_44 = arith.constant 9.99999974E-6 : f32
    %92 = vector.broadcast %cst_44 : f32 to vector<1x6x1xf32>
    %93 = arith.addf %91, %92 : vector<1x6x1xf32>
    %94 = math.rsqrt %93 : vector<1x6x1xf32>
    %95 = vector.broadcast %94 : vector<1x6x1xf32> to vector<2x6x32xf32>
    %96 = arith.mulf %84, %95 : vector<2x6x32xf32>
    %97 = vector.shape_cast %75 : vector<6x1xf32> to vector<1x6x1xf32>
    %98 = vector.broadcast %97 : vector<1x6x1xf32> to vector<2x6x32xf32>
    %99 = arith.mulf %96, %98 : vector<2x6x32xf32>
    %100 = vector.shape_cast %76 : vector<6x1xf32> to vector<1x6x1xf32>
    %101 = vector.broadcast %100 : vector<1x6x1xf32> to vector<2x6x32xf32>
    %102 = arith.addf %99, %101 : vector<2x6x32xf32>
    %c0_45 = arith.constant 0 : index
    %c0_46 = arith.constant 0 : index
    %103 = vector.load %arg9[%c0_45, %c0_46] : memref<32x8xf32, #tpu.memory_space<vmem>>, vector<32x8xf32>
    "tpu.trace_start"() <{level = 10 : i32, message = "bch,ho->bco"}> : () -> ()
    %cst_47 = arith.constant dense<0.000000e+00> : vector<2x6x8xf32>
    %104 = tpu.matmul %102, %103, %cst_47 {dimension_numbers = #tpu.dot_dimension_numbers<[2], [0], [0, 1], [1], [0, 0, 0, 1, 1, 1], [], []>} : vector<2x6x32xf32>, vector<32x8xf32>, vector<2x6x8xf32> -> vector<2x6x8xf32>
    "tpu.trace_stop"() : () -> ()
    "tpu.trace_start"() <{level = 10 : i32, message = "bcd,bdo->bco"}> : () -> ()
    %cst_48 = arith.constant dense<0.000000e+00> : vector<2x6x8xf32>
    %105 = tpu.matmul %61, %104, %cst_48 {dimension_numbers = #tpu.dot_dimension_numbers<[2], [1], [1], [2], [0, 0, 0, 1, 1, 2], [0], [0]>} : vector<2x6x6xf32>, vector<2x6x8xf32>, vector<2x6x8xf32> -> vector<2x6x8xf32>
    "tpu.trace_stop"() : () -> ()
    %c0_49 = arith.constant 0 : index
    %c0_50 = arith.constant 0 : index
    %106 = vector.load %arg10[%c0_49, %c0_50] : memref<1x8xf32, #tpu.memory_space<vmem>>, vector<1x8xf32>
    %107 = vector.shape_cast %106 : vector<1x8xf32> to vector<1x1x8xf32>
    %108 = vector.broadcast %107 : vector<1x1x8xf32> to vector<2x6x8xf32>
    %109 = arith.addf %105, %108 : vector<2x6x8xf32>
    %c0_51 = arith.constant 0 : index
    %c0_52 = arith.constant 0 : index
    %110 = vector.load %arg14[%c0_51, %c0_52] : memref<6x1xf32, #tpu.memory_space<vmem>>, vector<6x1xf32>
    %c0_53 = arith.constant 0 : index
    %c0_54 = arith.constant 0 : index
    %111 = vector.load %arg15[%c0_53, %c0_54] : memref<6x1xf32, #tpu.memory_space<vmem>>, vector<6x1xf32>
    %cst_55 = arith.constant dense<0.000000e+00> : vector<2x6xf32>
    %112 = vector.multi_reduction <add>, %109, %cst_55 [2] : vector<2x6x8xf32> to vector<2x6xf32>
    %113 = vector.shape_cast %112 : vector<2x6xf32> to vector<2x6x1xf32>
    %cst_56 = arith.constant dense<0.000000e+00> : vector<6x1xf32>
    %114 = vector.multi_reduction <add>, %113, %cst_56 [0] : vector<2x6x1xf32> to vector<6x1xf32>
    %115 = vector.shape_cast %114 : vector<6x1xf32> to vector<1x6x1xf32>
    %cst_57 = arith.constant 1.600000e+01 : f32
    %116 = vector.broadcast %cst_57 : f32 to vector<1x6x1xf32>
    %117 = arith.divf %115, %116 : vector<1x6x1xf32>
    %118 = vector.broadcast %117 : vector<1x6x1xf32> to vector<2x6x8xf32>
    %119 = arith.subf %109, %118 : vector<2x6x8xf32>
    %120 = arith.mulf %119, %119 : vector<2x6x8xf32>
    %cst_58 = arith.constant dense<0.000000e+00> : vector<2x6xf32>
    %121 = vector.multi_reduction <add>, %120, %cst_58 [2] : vector<2x6x8xf32> to vector<2x6xf32>
    %122 = vector.shape_cast %121 : vector<2x6xf32> to vector<2x6x1xf32>
    %cst_59 = arith.constant dense<0.000000e+00> : vector<6x1xf32>
    %123 = vector.multi_reduction <add>, %122, %cst_59 [0] : vector<2x6x1xf32> to vector<6x1xf32>
    %124 = vector.shape_cast %123 : vector<6x1xf32> to vector<1x6x1xf32>
    %cst_60 = arith.constant 1.600000e+01 : f32
    %125 = vector.broadcast %cst_60 : f32 to vector<1x6x1xf32>
    %126 = arith.divf %124, %125 : vector<1x6x1xf32>
    %cst_61 = arith.constant 9.99999974E-6 : f32
    %127 = vector.broadcast %cst_61 : f32 to vector<1x6x1xf32>
    %128 = arith.addf %126, %127 : vector<1x6x1xf32>
    %129 = math.rsqrt %128 : vector<1x6x1xf32>
    %130 = vector.broadcast %129 : vector<1x6x1xf32> to vector<2x6x8xf32>
    %131 = arith.mulf %119, %130 : vector<2x6x8xf32>
    %132 = vector.shape_cast %110 : vector<6x1xf32> to vector<1x6x1xf32>
    %133 = vector.broadcast %132 : vector<1x6x1xf32> to vector<2x6x8xf32>
    %134 = arith.mulf %131, %133 : vector<2x6x8xf32>
    %135 = vector.shape_cast %111 : vector<6x1xf32> to vector<1x6x1xf32>
    %136 = vector.broadcast %135 : vector<1x6x1xf32> to vector<2x6x8xf32>
    %137 = arith.addf %134, %136 : vector<2x6x8xf32>
    %c0_62 = arith.constant 0 : index
    %c0_63 = arith.constant 0 : index
    %c0_64 = arith.constant 0 : index
    %138 = vector.load %arg16[%c0_62, %c0_63, %c0_64] : memref<2x6x8xf32, #tpu.memory_space<vmem>>, vector<2x6x8xf32>
    tpu.vector_store %arg16[%c0_62, %c0_63, %c0_64], %137 {strides = array<i32>} : memref<2x6x8xf32, #tpu.memory_space<vmem>>, vector<2x6x8xf32>,
    return
  }
}

</mosaic_0001>

<bundles_post_ra>
// kernel: tpu_custom_call.1
= control target key start
LH: loop header
LB: loop body
LE: loop exit
PB: predicated region body
PF: predicated region fallthrough
CT: control target
= control target key end

     0   :  { %vm193_vm0 = vcmask 130048   ;;  %v3548_v0 = vmov 0.0   ;;  %v78_v27 = vlaneseq  ;;  %v3549_v28 = vmov 1983009808   ;;  %s3553_s22 = smov 32   ;;  %s4235_s1 = inlined_call_operand.vmem [shape: f32[160,16], index: 1, kind: input, shape index: {}]   ;;  %s4236_s3 = inlined_call_operand.vmem [shape: f32[160,16], index: 3, kind: input, shape index: {}]   ;;  %s4237_s0 = inlined_call_operand.vmem [shape: f32[2,6,16], index: 0, kind: input, shape index: {}]   ;;  %s4238_s2 = inlined_call_operand.vmem [shape: f32[1,160], index: 2, kind: input, shape index: {}]   ;;  %s4239_s4 = inlined_call_operand.vmem [shape: f32[1,160], index: 4, kind: input, shape index: {}]   ;;  %s4240_s5 = inlined_call_operand.vmem [shape: f32[10,6,6], index: 5, kind: input, shape index: {}]   ;;  %s4241_s7 = inlined_call_operand.vmem [shape: f32[16,32], index: 7, kind: input, shape index: {}]   ;;  %s4242_s6 = inlined_call_operand.vmem [shape: f32[1,6], index: 6, kind: input, shape index: {}]   ;;  %s4243_s8 = inlined_call_operand.vmem [shape: f32[1,32], index: 8, kind: input, shape index: {}]   ;;  %s4244_s11 = inlined_call_operand.<no memory space> [shape: f32[1], index: 11, kind: input, shape index: {}]   ;;  %s4245_s12 = inlined_call_operand.vmem [shape: f32[6,1], index: 12, kind: input, shape index: {}]   ;;  %s4246_s13 = inlined_call_operand.vmem [shape: f32[6,1], index: 13, kind: input, shape index: {}]   ;;  %s4247_s9 = inlined_call_operand.vmem [shape: f32[32,8], index: 9, kind: input, shape index: {}]   ;;  %s4248_s10 = inlined_call_operand.vmem [shape: f32[1,8], index: 10, kind: input, shape index: {}]   ;;  %s4249_s15 = inlined_call_operand.vmem [shape: f32[6,1], index: 15, kind: input, shape index: {}]   ;;  %s4250_s14 = inlined_call_operand.vmem [shape: f32[6,1], index: 14, kind: input, shape index: {}]   ;;  %s4251_s16 = inlined_call_operand.vmem [shape: f32[2,6,8], index: 16, kind: output, shape index: {}]  }
   0x1   :  { %4253 = sst [smem:[#allocation3_spill]] %s4235_s1  ;;  %258 = vmatprep.subr.mxu0 %v3548_v0  ;;  %504 = vmatprep.subr.mxu1 %v3548_v0  ;;  %v381_v2 = vld [vmem:[%s4236_s3 + $0x78] sm:$0xff]  ;;  %v380_v4 = vld [vmem:[%s4236_s3 + $0x70] sm:$0xff]  ;;  %v379_v6 = vld [vmem:[%s4236_s3 + $0x68] sm:$0xff]  ;;  %v90_v29 = vunpack.c.l.s4 %v3549_v28  ;;  %vm3550_vm1 = vmmov 0   ;;  %vm644_vm2 = vcmask 261120  }
   0x2   :  { %s4254_s23 = sld [smem:[#allocation3_spill]]  ;;  %3212 = vmatpush1.xpose.msk.msra.mxu1 %vm193_vm0, %v381_v2  ;;  %322 = vmatprep.mubr.f32.mxu0 %v3548_v0  ;;  %v378_v8 = vld [vmem:[%s4236_s3 + $0x60] sm:$0xff]  ;;  %v377_v10 = vld [vmem:[%s4236_s3 + $0x58] sm:$0xff]  ;;  %v376_v12 = vld [vmem:[%s4236_s3 + $0x50] sm:$0xff]  ;;  %v3780_v32 = vshrl.u32 %v78_v27, 7  ;;  %vm1517_vm3 = vcmask 46080  }
   0x3   :  { %506 = vmatprep.subr.mxu1 %v3548_v0  ;;  %568 = vmatprep.mubr.f32.mxu1 %v3548_v0  ;;  %v375_v14 = vld [vmem:[%s4236_s3 + $0x48] sm:$0xff]  ;;  %v374_v16 = vld [vmem:[%s4236_s3 + $0x40] sm:$0xff]  ;;  %v373_v18 = vld [vmem:[%s4236_s3 + $0x38] sm:$0xff]  ;;  %v91_v33 = vunpack.c.0.s8 %v90_v29  ;;  %vm1638_vm4 = vcmask 48128   ;;  %vm2568_vm5 = vcmask 1045504   ;;  %vm2742_vm7 = vcmask 259072  }
   0x4   :  { %v372_v20 = vld [vmem:[%s4236_s3 + $0x30] sm:$0xff]  ;;  %v371_v22 = vld [vmem:[%s4236_s3 + $0x28] sm:$0xff]  ;;  %v370_v24 = vld [vmem:[%s4236_s3 + $0x20] sm:$0xff]  ;;  %v84_v2 = vsub.s32 1, %v3780_v32  ;;  %vm3140_vm9 = vcmask 62464  }
   0x5   :  { %v369_v26 = vld [vmem:[%s4236_s3 + $0x18] sm:$0xff]  ;;  %v368_v31 = vld [vmem:[%s4236_s3 + $0x10] sm:$0xff]  ;;  %v367_v35 = vld [vmem:[%s4236_s3 + $0x8] sm:$0xff]  ;;  %v3793_v36 = vsub.s32 %v91_v33, %v3780_v32 }
   0x6   :  { %3213 = vmatpush1.xpose.msk.msra.mxu1 %vm193_vm0, %v380_v4  ;;  %v54_v37 = vld [vmem:[%s4237_s0] sm:$0x3f]  ;;  %v55_v42 = vld [vmem:[%s4237_s0 + $0x8] sm:$0x3f]  ;;  %v385_v44 = vld [vmem:[%s4236_s3 + $0x98] sm:$0xff] }
   0x7   :  { %508 = vmatprep.subr.mxu1 %v3548_v0  ;;  %v366_v39 = vld [vmem:[%s4236_s3] sm:$0xff]  ;;  %v88_v40 = vcombine.high %v54_v37, %v54_v37  ;;  %v95_v41 = vrot.slane %v54_v37, %v3793_v36  ;;  %v111_v47 = vrot.slane %v55_v42, %v3793_v36  ;;  %v384_v49 = vld [vmem:[%s4236_s3 + $0x90] sm:$0xff]  ;;  %v104_v52 = vcombine.high %v55_v42, %v55_v42  ;;  %v383_v54 = vld [vmem:[%s4236_s3 + $0x88] sm:$0xff] }
   0x8   :  { %v71_v1 = vld [vmem:[%s4254_s23 + $0x78] sm:$0xff]  ;;  %v70_v3 = vld [vmem:[%s4254_s23 + $0x70] sm:$0xff]  ;;  %v69_v5 = vld [vmem:[%s4254_s23 + $0x68] sm:$0xff] }
   0x9   :  { %3190 = vmatpush1.xpose.msk.msra.mxu0 %vm193_vm0, %v71_v1  ;;  %v68_v7 = vld [vmem:[%s4254_s23 + $0x60] sm:$0xff]  ;;  %v67_v9 = vld [vmem:[%s4254_s23 + $0x58] sm:$0xff]  ;;  %v66_v11 = vld [vmem:[%s4254_s23 + $0x50] sm:$0xff]  ;;  %v102_v45 = vrot.slane %v88_v40, %v3793_v36  ;;  %v103_v46 = vcombine.high %v95_v41, %v95_v41  ;;  %v118_v57 = vrot.slane %v104_v52, %v3793_v36  ;;  %v119_v58 = vcombine.high %v111_v47, %v111_v47 }
   0xa   :  { %260 = vmatprep.subr.mxu0 %v3548_v0  ;;  %3214 = vmatpush1.xpose.msk.msra.mxu1 %vm193_vm0, %v379_v6  ;;  %v65_v13 = vld [vmem:[%s4254_s23 + $0x48] sm:$0xff]  ;;  %v64_v15 = vld [vmem:[%s4254_s23 + $0x40] sm:$0xff]  ;;  %v63_v17 = vld [vmem:[%s4254_s23 + $0x38] sm:$0xff]  ;;  %v80_v1 = vsub.s32 0, %v3780_v32 }
   0xb   :  { %510 = vmatprep.subr.mxu1 %v3548_v0  ;;  %v62_v19 = vld [vmem:[%s4254_s23 + $0x30] sm:$0xff]  ;;  %v61_v21 = vld [vmem:[%s4254_s23 + $0x28] sm:$0xff]  ;;  %v60_v23 = vld [vmem:[%s4254_s23 + $0x20] sm:$0xff]  ;;  %v137_v50 = vcombine.low %v95_v41, %v103_v46  ;;  %v138_v51 = vcombine.low %v102_v45, %v111_v47  ;;  %v154_v62 = vcombine.low %v119_v58, %v118_v57 }
   0xc   :  { %v59_v25 = vld [vmem:[%s4254_s23 + $0x18] sm:$0xff]  ;;  %v58_v30 = vld [vmem:[%s4254_s23 + $0x10] sm:$0xff]  ;;  %v57_v34 = vld [vmem:[%s4254_s23 + $0x8] sm:$0xff] }
   0xd   :  { %3191 = vmatpush1.xpose.msk.msra.mxu0 %vm193_vm0, %v70_v3  ;;  %v56_v38 = vld [vmem:[%s4254_s23] sm:$0xff]  ;;  %v75_v43 = vld [vmem:[%s4254_s23 + $0x98] sm:$0xff]  ;;  %v74_v48 = vld [vmem:[%s4254_s23 + $0x90] sm:$0xff]  ;;  %v145_v55 = vrot.slane %v137_v50, %v3793_v36  ;;  %v152_v56 = vrot.slane %v138_v51, %v3793_v36  ;;  %v3868_v63 = vrot.slane %v154_v62, %v3793_v36 }
   0xe   :  { %262 = vmatprep.subr.mxu0 %v3548_v0  ;;  %3215 = vmatpush1.xpose.msk.msra.mxu1 %vm193_vm0, %v378_v8  ;;  %v73_v53 = vld [vmem:[%s4254_s23 + $0x88] sm:$0xff]  ;;  %v72_v59 = vld [vmem:[%s4254_s23 + $0x80] sm:$0xff] }
   0xf   :  { %512 = vmatprep.subr.mxu1 %v3548_v0  ;;  %v382_v60 = vld [vmem:[%s4236_s3 + $0x80] sm:$0xff]  ;;  %v3857_v61 = vcombine.low %v145_v55, %v152_v56 }
  0x10   :  { %v76_v3 = vld [vmem:[%s4238_s2] sm:$0x3]  ;;  %s3551_s2 = smov 96  }
  0x11   :  { %3192 = vmatpush1.xpose.msk.msra.mxu0 %vm193_vm0, %v69_v5  ;;  %v386_v4 = vld [vmem:[%s4239_s4] sm:$0x3]  ;;  %v81_v5 = vrot.slane %v76_v3, %v80_v1  ;;  %v85_v6 = vrot.slane %v76_v3, %v84_v2  ;;  %s3552_s4 = smov 64  }
  0x12   :  { %264 = vmatprep.subr.mxu0 %v3548_v0  ;;  %3216 = vmatpush1.xpose.msk.msra.mxu1 %vm193_vm0, %v377_v10  ;;  %v395_v8 = vrot.slane %v386_v4, %v84_v2 }
  0x13   :  { %514 = vmatprep.subr.mxu1 %v3548_v0 }
  0x15   :  { %3193 = vmatpush1.xpose.msk.msra.mxu0 %vm193_vm0, %v68_v7  ;;  %v391_v7 = vrot.slane %v386_v4, %v80_v1 }
  0x16   :  { %266 = vmatprep.subr.mxu0 %v3548_v0  ;;  %3217 = vmatpush1.xpose.msk.msra.mxu1 %vm193_vm0, %v376_v12 }
  0x17   :  { %516 = vmatprep.subr.mxu1 %v3548_v0  ;;  %v396_v10 = vcombine.low %v391_v7, %v395_v8 }
  0x19   :  { %3194 = vmatpush1.xpose.msk.msra.mxu0 %vm193_vm0, %v67_v9  ;;  %v120_v9 = vcombine.low %v81_v5, %v85_v6 }
  0x1a   :  { %268 = vmatprep.subr.mxu0 %v3548_v0  ;;  %3218 = vmatpush1.xpose.msk.msra.mxu1 %vm193_vm0, %v375_v14  ;;  %v404_v14 = vrot.slane %v396_v10, %v3793_v36 }
  0x1b   :  { %518 = vmatprep.subr.mxu1 %v3548_v0  ;;  %v128_v12 = vrot.slane %v120_v9, %v3793_v36 }
  0x1d   :  { %3195 = vmatpush1.xpose.msk.msra.mxu0 %vm193_vm0, %v66_v11  ;;  %v121_v11 = vcombine.high %v81_v5, %v85_v6 }
  0x1e   :  { %270 = vmatprep.subr.mxu0 %v3548_v0  ;;  %3219 = vmatpush1.xpose.msk.msra.mxu1 %vm193_vm0, %v374_v16  ;;  %v136_v16 = vcombine.high %v128_v12, %v128_v12 }
  0x1f   :  { %520 = vmatprep.subr.mxu1 %v3548_v0 }
  0x21   :  { %3196 = vmatpush1.xpose.msk.msra.mxu0 %vm193_vm0, %v65_v13  ;;  %v397_v13 = vcombine.high %v391_v7, %v395_v8 }
  0x22   :  { %272 = vmatprep.subr.mxu0 %v3548_v0  ;;  %3220 = vmatpush1.xpose.msk.msra.mxu1 %vm193_vm0, %v373_v18  ;;  %v412_v18 = vcombine.high %v404_v14, %v404_v14 }
  0x23   :  { %522 = vmatprep.subr.mxu1 %v3548_v0 }
  0x25   :  { %3197 = vmatpush1.xpose.msk.msra.mxu0 %vm193_vm0, %v64_v15  ;;  %v135_v15 = vrot.slane %v121_v11, %v3793_v36 }
  0x26   :  { %274 = vmatprep.subr.mxu0 %v3548_v0  ;;  %3221 = vmatpush1.xpose.msk.msra.mxu1 %vm193_vm0, %v372_v20 }
  0x27   :  { %524 = vmatprep.subr.mxu1 %v3548_v0  ;;  %v163_v20 = vcombine.low %v135_v15, %v128_v12  ;;  %v180_v27 = vcombine.low %v136_v16, %v135_v15 }
  0x29   :  { %3198 = vmatpush1.xpose.msk.msra.mxu0 %vm193_vm0, %v63_v17  ;;  %v411_v17 = vrot.slane %v397_v13, %v3793_v36 }
  0x2a   :  { %276 = vmatprep.subr.mxu0 %v3548_v0  ;;  %3222 = vmatpush1.xpose.msk.msra.mxu1 %vm193_vm0, %v371_v22 }
  0x2b   :  { %526 = vmatprep.subr.mxu1 %v3548_v0  ;;  %v414_v22 = vcombine.low %v411_v17, %v404_v14  ;;  %v431_v28 = vcombine.low %v412_v18, %v411_v17 }
  0x2d   :  { %3199 = vmatpush1.xpose.msk.msra.mxu0 %vm193_vm0, %v62_v19  ;;  %v162_v19 = vcombine.low %v128_v12, %v136_v16  ;;  %v438_v37 = vrot.slane %v431_v28, %v3793_v36 }
  0x2e   :  { %278 = vmatprep.subr.mxu0 %v3548_v0  ;;  %3223 = vmatpush1.xpose.msk.msra.mxu1 %vm193_vm0, %v370_v24  ;;  %v177_v24 = vrot.slane %v163_v20, %v3793_v36 }
  0x2f   :  { %528 = vmatprep.subr.mxu1 %v3548_v0  ;;  %v439_v47 = vcombine.high %v438_v37, %v438_v37 }
  0x31   :  { %3200 = vmatpush1.xpose.msk.msra.mxu0 %vm193_vm0, %v61_v21  ;;  %v413_v21 = vcombine.low %v404_v14, %v412_v18 }
  0x32   :  { %280 = vmatprep.subr.mxu0 %v3548_v0  ;;  %3224 = vmatpush1.xpose.msk.msra.mxu1 %vm193_vm0, %v369_v26  ;;  %v428_v26 = vrot.slane %v414_v22, %v3793_v36 }
  0x33   :  { %530 = vmatprep.subr.mxu1 %v3548_v0 }
  0x35   :  { %3201 = vmatpush1.xpose.msk.msra.mxu0 %vm193_vm0, %v60_v23  ;;  %v170_v23 = vrot.slane %v162_v19, %v3793_v36 }
  0x36   :  { %282 = vmatprep.subr.mxu0 %v3548_v0  ;;  %3225 = vmatpush1.xpose.msk.msra.mxu1 %vm193_vm0, %v368_v31 }
  0x37   :  { %532 = vmatprep.subr.mxu1 %v3548_v0  ;;  %v178_v29 = vcombine.low %v170_v23, %v177_v24  ;;  %v179_v31 = vcombine.high %v170_v23, %v177_v24 }
  0x39   :  { %3202 = vmatpush1.xpose.msk.msra.mxu0 %vm193_vm0, %v59_v25  ;;  %v421_v25 = vrot.slane %v413_v21, %v3793_v36 }
  0x3a   :  { %284 = vmatprep.subr.mxu0 %v3548_v0  ;;  %3226 = vmatpush1.xpose.msk.msra.mxu1 %vm193_vm0, %v367_v35  ;;  %v187_v35 = vrot.slane %v180_v27, %v3793_v36 }
  0x3b   :  { %534 = vmatprep.subr.mxu1 %v3548_v0  ;;  %v430_v32 = vcombine.high %v421_v25, %v428_v26 }
  0x3c   :  { %v188_v46 = vcombine.high %v187_v35, %v187_v35 }
  0x3d   :  { %3203 = vmatpush1.xpose.msk.msra.mxu0 %vm193_vm0, %v58_v30  ;;  %v429_v30 = vcombine.low %v421_v25, %v428_v26 }
  0x3e   :  { %286 = vmatprep.subr.mxu0 %v3548_v0  ;;  %3227 = vmatpush1.xpose.msk.msra.mxu1 %vm193_vm0, %v366_v39 }
  0x3f   :  { %560 = vmatprep.subr.mxu1 %v3548_v0 }
  0x41   :  { %3204 = vmatpush1.xpose.msk.msra.mxu0 %vm193_vm0, %v57_v34 }
  0x42   :  { %288 = vmatprep.subr.mxu0 %v3548_v0  ;;  %3228 = vmatpush2.xpose.msk.msra.mxu1 %vm193_vm0, %v385_v44 }
  0x43   :  { %562 = vmatprep.subr.mxu1 %v3548_v0 }
  0x45   :  { %3205 = vmatpush1.xpose.msk.msra.mxu0 %vm193_vm0, %v56_v38 }
  0x46   :  { %314 = vmatprep.subr.mxu0 %v3548_v0  ;;  %3229 = vmatpush2.xpose.msk.msra.mxu1 %vm193_vm0, %v384_v49 }
  0x47   :  { %564 = vmatprep.subr.mxu1 %v3548_v0 }
  0x49   :  { %3206 = vmatpush2.xpose.msk.msra.mxu0 %vm193_vm0, %v75_v43 }
  0x4a   :  { %316 = vmatprep.subr.mxu0 %v3548_v0  ;;  %3230 = vmatpush2.xpose.msk.msra.mxu1 %vm193_vm0, %v383_v54 }
  0x4b   :  { %566 = vmatprep.subr.mxu1 %v3548_v0 }
  0x4d   :  { %3207 = vmatpush2.xpose.msk.msra.mxu0 %vm193_vm0, %v74_v48 }
  0x4e   :  { %318 = vmatprep.subr.mxu0 %v3548_v0  ;;  %3231 = vmatpush2.xpose.msk.msra.mxu1 %vm193_vm0, %v382_v60 }
  0x4f   :  { %3352 = vmatprep.subr.mxu1 %v3548_v0 }
  0x51   :  { %3208 = vmatpush2.xpose.msk.msra.mxu0 %vm193_vm0, %v73_v53  ;;  %3232 = vmatmul.mubr.msk.f32.vlgmr.msra.gmra.mxu1 %vm193_vm0, %v3857_v61 }
  0x52   :  { %320 = vmatprep.subr.mxu0 %v3548_v0  ;;  %574 = vmatprep.mubr.f32.mxu1 %v3548_v0 }
  0x55   :  { %3209 = vmatpush2.xpose.msk.msra.mxu0 %vm193_vm0, %v72_v59  ;;  %3233 = vmatmul.mubr.msk.f32.gmra.mxu1 %vm193_vm0, %v3868_v63 }
  0x56   :  { %3347 = vmatprep.subr.mxu0 %v3548_v0  ;;  %3354 = vmatprep.mubr.msk.f32.mxu1 %vm3550_vm1, %v3548_v0 }
  0x58   :  { %3210 = vmatmul.mubr.msk.f32.vlgmr.msra.gmra.mxu0 %vm193_vm0, %v3857_v61 }
  0x59   :  { %328 = vmatprep.mubr.f32.mxu0 %v3548_v0 }
  0x5c   :  { %3211 = vmatmul.mubr.msk.f32.gmra.mxu0 %vm193_vm0, %v3868_v63 }
  0x5d   :  { %3349 = vmatprep.mubr.msk.f32.mxu0 %vm3550_vm1, %v3548_v0 }
 0x111   :  { %v570_v34 = vpop.f32.mrf.mxu1 }
 0x112   :  { %v571_v41 = vadd.f32 %v570_v34, %v429_v30 }
 0x113   :  { %v572_v39 = vpop.f32.mrf.mxu1 }
 0x114   :  { %v573_v43 = vadd.f32 %v572_v39, %v430_v32 }
 0x115   :  { %v576_v45 = vpop.f32.mrf.mxu1 }
 0x116   :  { %v585_v50 = vcombine.low %v571_v41, %v573_v43  ;;  %v586_v51 = vcombine.high %v571_v41, %v573_v43  ;;  %v577_v59 = vadd.f32 %v576_v45, %v438_v37 }
 0x117   :  { %v578_v53 = vpop.f32.mrf.mxu1 }
 0x118   :  { %v324_v33 = vpop.f32.mrf.mxu0  ;;  %v593_v56 = vrot.slane %v585_v50, %v3793_v36  ;;  %v600_v57 = vrot.slane %v586_v51, %v3793_v36  ;;  %v579_v2 = vadd.f32 %v578_v53, %v439_v47 }
 0x119   :  { %v325_v40 = vadd.f32 %v324_v33, %v178_v29 }
 0x11a   :  { %v326_v38 = vpop.f32.mrf.mxu0  ;;  %v601_v6 = vcombine.high %v593_v56, %v593_v56  ;;  %v602_v9 = vcombine.high %v600_v57, %v600_v57  ;;  %v642_v10 = vrot.slane %v600_v57, %v3793_v36  ;;  %v1296_v12 = vrot.slane %v593_v56, 2 }
 0x11b   :  { %v327_v42 = vadd.f32 %v326_v38, %v179_v31  ;;  %v1298_v14 = vrot.slane %v600_v57, 2  ;;  %v603_v18 = vcombine.low %v577_v59, %v579_v2 }
 0x11c   :  { %v330_v44 = vpop.f32.mrf.mxu0  ;;  %v628_v11 = vcombine.low %v593_v56, %v601_v6  ;;  %v1297_v13 = vrot.slane %v601_v6, 2  ;;  %v1408_v24 = vrot.slane %v602_v9, 2 }
 0x11d   :  { %v339_v48 = vcombine.low %v325_v40, %v327_v42  ;;  %v340_v49 = vcombine.high %v325_v40, %v327_v42  ;;  %v331_v58 = vadd.f32 %v330_v44, %v187_v35  ;;  %v610_v26 = vrot.slane %v603_v18, %v3793_v36 }
 0x11e   :  { %v332_v52 = vpop.f32.mrf.mxu0  ;;  %v1315_v20 = vcombine.low %v1296_v12, %v1297_v13  ;;  %v635_v21 = vrot.slane %v628_v11, %v3793_v36  ;;  %v1329_v28 = vrot.slane %v1298_v14, %v3793_v36 }
 0x11f   :  { %v347_v54 = vrot.slane %v339_v48, %v3793_v36  ;;  %v354_v55 = vrot.slane %v340_v49, %v3793_v36  ;;  %v333_v1 = vadd.f32 %v332_v52, %v188_v46  ;;  %v611_v34 = vcombine.high %v610_v26, %v610_v26 }
 0x120   :  { %v1322_v27 = vrot.slane %v1315_v20, %v3793_v36  ;;  %v643_v29 = vcombine.low %v635_v21, %v642_v10  ;;  %v735_v35 = vcombine.low %v602_v9, %v610_v26  ;;  %v1409_v37 = vrot.slane %v610_v26, 2 }
 0x121   :  { %v355_v60 = vcombine.high %v347_v54, %v347_v54  ;;  %v356_v62 = vcombine.high %v354_v55, %v354_v55  ;;  %v626_v3 = vrot.slane %v354_v55, %v3793_v36  ;;  %v1293_v4 = vrot.slane %v347_v54, 2 }
 0x122   :  { %v1295_v5 = vrot.slane %v354_v55, 2  ;;  %v357_v17 = vcombine.low %v331_v58, %v333_v1  ;;  %827 = vrot.lane.b32.xlu0 %v643_v29, %s3551_s2  ;;  %3348 = vmatpush3.xpose.msk.msra.mxu0 %vm644_vm2, %v643_v29  ;;  %v3913_v38 = vcombine.low %v1322_v27, %v1329_v28  ;;  %v749_v42 = vrot.slane %v611_v34, %v3793_v36 }
 0x123   :  { %v612_v7 = vcombine.low %v347_v54, %v355_v60  ;;  %v1294_v8 = vrot.slane %v355_v60, 2  ;;  %v1405_v16 = vrot.slane %v356_v62, 2  ;;  %v1410_v43 = vrot.slane %v611_v34, 2  ;;  %3357 = vmatprep.subr.mxu0 %v3548_v0 }
 0x124   :  { %v1313_v19 = vrot.slane %v1295_v5, %v3793_v36  ;;  %v364_v25 = vrot.slane %v357_v17, %v3793_v36  ;;  %v742_v44 = vrot.slane %v735_v35, %v3793_v36  ;;  %v1427_v45 = vcombine.low %v1408_v24, %v1409_v37 }
 0x125   :  { %v1299_v15 = vcombine.low %v1293_v4, %v1294_v8  ;;  %v619_v22 = vrot.slane %v612_v7, %v3793_v36  ;;  %v1441_v50 = vrot.slane %v1410_v43, %v3793_v36 }
 0x126   :  { %v365_v31 = vcombine.high %v364_v25, %v364_v25  ;;  %v719_v32 = vcombine.low %v356_v62, %v364_v25  ;;  %v1406_v33 = vrot.slane %v364_v25, 2  ;;  %v1434_v51 = vrot.slane %v1427_v45, %v3793_v36  ;;  %983 = vrot.lane.b32.xlu0 %v643_v29, %s3552_s4 }
 0x127   :  { %v1306_v23 = vrot.slane %v1299_v15, %v3793_v36  ;;  %v627_v30 = vcombine.low %v619_v22, %v626_v3  ;;  %v750_v52 = vcombine.low %v742_v44, %v749_v42 }
 0x128   :  { %v1407_v40 = vrot.slane %v365_v31, 2  ;;  %v1411_v41 = vcombine.low %v1405_v16, %v1406_v33  ;;  %v726_v46 = vrot.slane %v719_v32, %v3793_v36  ;;  %v733_v47 = vrot.slane %v365_v31, %v3793_v36 }
 0x129   :  { %v3915_v39 = vcombine.low %v1306_v23, %v1313_v19  ;;  %825 = vrot.lane.b32.xlu1 %v627_v30, %s3551_s2  ;;  %3350 = vmatmul.mubr.msk.f32.vlgmr.msra.gmra.mxu0 %vm644_vm2, %v627_v30  ;;  %v1442_v55 = vcombine.low %v1434_v51, %v1441_v50 }
 0x12a   :  { %v1418_v48 = vrot.slane %v1411_v41, %v3793_v36  ;;  %v1425_v49 = vrot.slane %v1407_v40, %v3793_v36  ;;  %v734_v53 = vcombine.low %v726_v46, %v733_v47  ;;  %3359 = vmatprep.mubr.msk.f32.mxu0 %vm3550_vm1, %v3548_v0  ;;  %3353 = vmatpush3.xpose.msk.msra.mxu1 %vm644_vm2, %v750_v52 }
 0x12b   :  { %3362 = vmatprep.subr.mxu1 %v3548_v0  ;;  %905 = vrot.lane.b32.xlu0 %v750_v52, %s3551_s2 }
 0x12c   :  { %v1426_v54 = vcombine.low %v1418_v48, %v1425_v49  ;;  %v1628_v48 = vld [vmem:[%s4240_s5] sm:$0x3f]  ;;  %v1629_v49 = vld [vmem:[%s4240_s5 + $0x8] sm:$0x3f] }
 0x12d   :  { %903 = vrot.lane.b32.xlu1 %v734_v53, %s3551_s2  ;;  %3355 = vmatmul.mubr.msk.f32.vlgmr.msra.gmra.mxu1 %vm644_vm2, %v734_v53 }
 0x12e   :  { %3364 = vmatprep.mubr.msk.f32.mxu1 %vm3550_vm1, %v3548_v0 }
 0x12f   :  { %981 = vrot.lane.b32.xlu0 %v627_v30, %s3552_s4 }
 0x131   :  { %1061 = vrot.lane.b32.xlu1 %v750_v52, %s3552_s4 }
 0x133   :  { %1139 = vrot.lane.b32.xlu0 %v643_v29, %s3553_s22 }
 0x135   :  { %1059 = vrot.lane.b32.xlu1 %v734_v53, %s3552_s4 }
 0x137   :  { %1137 = vrot.lane.b32.xlu0 %v627_v30, %s3553_s22 }
 0x139   :  { %1217 = vrot.lane.b32.xlu1 %v750_v52, %s3553_s22 }
 0x13d   :  { %1215 = vrot.lane.b32.xlu1 %v734_v53, %s3553_s22 }
 0x194   :  { %v828_v56 = vpop.permute.xlu0 %827 }
 0x195   :  { %3358 = vmatpush3.xpose.msk.msra.mxu0 %vm644_vm2, %v828_v56 }
 0x196   :  { %3367 = vmatprep.subr.mxu0 %v3548_v0 }
 0x198   :  { %v984_v58 = vpop.permute.xlu0 %983 }
 0x19b   :  { %v826_v57 = vpop.permute.xlu1 %825 }
 0x19c   :  { %3360 = vmatmul.mubr.msk.f32.vlgmr.msra.gmra.mxu0 %vm644_vm2, %v826_v57 }
 0x19d   :  { %3368 = vmatpush3.xpose.msk.msra.mxu0 %vm644_vm2, %v984_v58  ;;  %3369 = vmatprep.mubr.msk.f32.mxu0 %vm3550_vm1, %v3548_v0  ;;  %v906_v60 = vpop.permute.xlu0 %905 }
 0x19e   :  { %3377 = vmatprep.subr.mxu0 %v3548_v0  ;;  %3363 = vmatpush3.xpose.msk.msra.mxu1 %vm644_vm2, %v906_v60 }
 0x19f   :  { %v904_v59 = vpop.permute.xlu1 %903  ;;  %3372 = vmatprep.subr.mxu1 %v3548_v0 }
 0x1a1   :  { %v982_v1 = vpop.permute.xlu0 %981  ;;  %3365 = vmatmul.mubr.msk.f32.vlgmr.msra.gmra.mxu1 %vm644_vm2, %v904_v59 }
 0x1a2   :  { %3370 = vmatmul.mubr.msk.f32.vlgmr.msra.gmra.mxu0 %vm644_vm2, %v982_v1  ;;  %3374 = vmatprep.mubr.msk.f32.mxu1 %vm3550_vm1, %v3548_v0 }
 0x1a3   :  { %v1062_v62 = vpop.permute.xlu1 %1061  ;;  %3379 = vmatprep.mubr.msk.f32.mxu0 %vm3550_vm1, %v3548_v0 }
 0x1a4   :  { %3373 = vmatpush3.xpose.msk.msra.mxu1 %vm644_vm2, %v1062_v62 }
 0x1a5   :  { %3382 = vmatprep.subr.mxu1 %v3548_v0  ;;  %v1140_v3 = vpop.permute.xlu0 %1139 }
 0x1a6   :  { %3378 = vmatpush3.xpose.msk.msra.mxu0 %vm644_vm2, %v1140_v3 }
 0x1a7   :  { %v1060_v2 = vpop.permute.xlu1 %1059  ;;  %3387 = vmatprep.subr.mxu0 %v3548_v0 }
 0x1a8   :  { %3375 = vmatmul.mubr.msk.f32.vlgmr.msra.gmra.mxu1 %vm644_vm2, %v1060_v2 }
 0x1a9   :  { %3384 = vmatprep.mubr.msk.f32.mxu1 %vm3550_vm1, %v3548_v0  ;;  %v1138_v5 = vpop.permute.xlu0 %1137 }
 0x1aa   :  { %3380 = vmatmul.mubr.msk.f32.vlgmr.msra.gmra.mxu0 %vm644_vm2, %v1138_v5 }
 0x1ab   :  { %v1218_v4 = vpop.permute.xlu1 %1217  ;;  %3388 = vmatpush3.xpose.msk.msra.mxu0 %vm644_vm2, %v3913_v38  ;;  %3389 = vmatprep.mubr.msk.f32.mxu0 %vm3550_vm1, %v3548_v0 }
 0x1ac   :  { %3383 = vmatpush3.xpose.msk.msra.mxu1 %vm644_vm2, %v1218_v4  ;;  %3397 = vmatprep.subr.mxu0 %v3548_v0 }
 0x1ad   :  { %3392 = vmatprep.subr.mxu1 %v3548_v0 }
 0x1ae   :  { %3390 = vmatmul.mubr.msk.f32.vlgmr.msra.gmra.mxu0 %vm644_vm2, %v3915_v39 }
 0x1af   :  { %v1216_v6 = vpop.permute.xlu1 %1215  ;;  %3399 = vmatprep.mubr.msk.f32.mxu0 %vm3550_vm1, %v3548_v0  ;;  %3398 = vmatpush3.xpose.msk.msra.mxu0 %vm1638_vm4, %v1628_v48 }
 0x1b0   :  { %3385 = vmatmul.mubr.msk.f32.vlgmr.msra.gmra.mxu1 %vm644_vm2, %v1216_v6  ;;  %3407 = vmatprep.subr.mxu0 %v3548_v0 }
 0x1b1   :  { %3393 = vmatpush3.xpose.msk.msra.mxu1 %vm644_vm2, %v1442_v55  ;;  %3394 = vmatprep.mubr.msk.f32.mxu1 %vm3550_vm1, %v3548_v0 }
 0x1b2   :  { %3402 = vmatprep.subr.mxu1 %v3548_v0 }
 0x1b4   :  { %3395 = vmatmul.mubr.msk.f32.vlgmr.msra.gmra.mxu1 %vm644_vm2, %v1426_v54 }
 0x1b5   :  { %3404 = vmatprep.mubr.msk.f32.mxu1 %vm3550_vm1, %v3548_v0  ;;  %3403 = vmatpush3.xpose.msk.msra.mxu1 %vm1638_vm4, %v1629_v49 }
 0x1b6   :  { %3412 = vmatprep.subr.mxu1 %v3548_v0 }
 0x1e9   :  { %v715_v7 = vpop.f32.mrf.mxu0 }
 0x1ea   :  { %v1518_v8 = vsel %vm1517_vm3, %v715_v7, -inf }
 0x1eb   :  { %1519 = vmax.xlane.f32.xlu0 %v1518_v8  ;;  %v3351_v9 = vpop.f32.mrf.mxu0 }
 0x1ed   :  { %v821_v10 = vpop.f32.mrf.mxu1 }
 0x1ee   :  { %v1521_v11 = vsel %vm1517_vm3, %v821_v10, -inf }
 0x1ef   :  { %v3356_v12 = vpop.f32.mrf.mxu1  ;;  %1522 = vmax.xlane.f32.xlu1 %v1521_v11 }
 0x25c   :  { %v899_v13 = vpop.f32.mrf.mxu0 }
 0x25d   :  { %v1524_v14 = vsel %vm1517_vm3, %v899_v13, -inf }
 0x25e   :  { %1525 = vmax.xlane.f32.xlu0 %v1524_v14  ;;  %v3361_v15 = vpop.f32.mrf.mxu0 }
 0x261   :  { %v977_v16 = vpop.f32.mrf.mxu1 }
 0x262   :  { %v1055_v17 = vpop.f32.mrf.mxu0  ;;  %v1527_v18 = vsel %vm1517_vm3, %v977_v16, -inf }
 0x263   :  { %v3366_v19 = vpop.f32.mrf.mxu1  ;;  %1528 = vmax.xlane.f32.xlu0 %v1527_v18  ;;  %v1530_v20 = vsel %vm1517_vm3, %v1055_v17, -inf }
 0x264   :  { %1531 = vmax.xlane.f32.xlu1 %v1530_v20  ;;  %v3371_v21 = vpop.f32.mrf.mxu0 }
 0x268   :  { %v1133_v22 = vpop.f32.mrf.mxu1 }
 0x269   :  { %v1533_v23 = vsel %vm1517_vm3, %v1133_v22, -inf }
 0x26a   :  { %v3376_v24 = vpop.f32.mrf.mxu1  ;;  %1534 = vmax.xlane.f32.xlu0 %v1533_v23  ;;  %v1211_v25 = vpop.f32.mrf.mxu0 }
 0x26b   :  { %v1536_v26 = vsel %vm1517_vm3, %v1211_v25, -inf }
 0x26c   :  { %1537 = vmax.xlane.f32.xlu1 %v1536_v26  ;;  %v3381_v28 = vpop.f32.mrf.mxu0 }
 0x26e   :  { %v1401_v31 = vpop.f32.mrf.mxu0 }
 0x26f   :  { %v1542_v32 = vsel %vm1517_vm3, %v1401_v31, -inf }
 0x270   :  { %v1289_v27 = vpop.f32.mrf.mxu1  ;;  %1543 = vmax.xlane.f32.xlu1 %v1542_v32  ;;  %v3391_v34 = vpop.f32.mrf.mxu0 }
 0x271   :  { %v1539_v29 = vsel %vm1517_vm3, %v1289_v27, -inf }
 0x272   :  { %v3386_v30 = vpop.f32.mrf.mxu1  ;;  %1540 = vmax.xlane.f32.xlu0 %v1539_v29 }
 0x274   :  { %v1513_v33 = vpop.f32.mrf.mxu1  ;;  %v1520_v37 = vpop.xlane.xlu0 %1519 }
 0x275   :  { %v1545_v35 = vsel %vm1517_vm3, %v1513_v33, -inf  ;;  %v1548_v39 = vsub.f32 %v715_v7, %v1520_v37  ;;  %v1631_v37 = vld [vmem:[%s4240_s5 + $0x18] sm:$0x3f] }
 0x276   :  { %v3396_v38 = vpop.f32.mrf.mxu1  ;;  %1546 = vmax.xlane.f32.xlu0 %v1545_v35 }
 0x277   :  { %v1558_v40 = vmul.f32 1.442695, %v1548_v39 }
 0x278   :  { %v1523_v41 = vpop.xlane.xlu1 %1522 }
 0x279   :  { %3496 = vpow2.f32 %v1558_v40  ;;  %v1549_v42 = vsub.f32 %v821_v10, %v1523_v41 }
 0x27b   :  { %v1560_v43 = vmul.f32 1.442695, %v1549_v42 }
 0x27d   :  { %3498 = vpow2.f32 %v1560_v43 }
 0x286   :  { %v3986_v44 = vpop.eup %3496 }
 0x287   :  { %v1578_v45 = vsel %vm1517_vm3, %v3986_v44, 0.0 }
 0x288   :  { %1579 = vadd.xlane.f32.xlu1 %v1578_v45 }
 0x28a   :  { %v3990_v46 = vpop.eup %3498 }
 0x28b   :  { %v1581_v47 = vsel %vm1517_vm3, %v3990_v46, 0.0 }
 0x28c   :  { %1582 = vadd.xlane.f32.xlu0 %v1581_v47 }
 0x2e7   :  { %v1526_v50 = vpop.xlane.xlu0 %1525 }
 0x2e8   :  { %v1550_v51 = vsub.f32 %v899_v13, %v1526_v50 }
 0x2ea   :  { %v1562_v52 = vmul.f32 1.442695, %v1550_v51 }
 0x2ec   :  { %3500 = vpow2.f32 %v1562_v52  ;;  %v1529_v53 = vpop.xlane.xlu0 %1528  ;;  %v1633_v52 = vld [vmem:[%s4240_s5 + $0x28] sm:$0x3f] }
 0x2ed   :  { %v1551_v54 = vsub.f32 %v977_v16, %v1529_v53  ;;  %v1532_v55 = vpop.xlane.xlu1 %1531 }
 0x2ee   :  { %v1552_v56 = vsub.f32 %v1055_v17, %v1532_v55 }
 0x2ef   :  { %v1564_v57 = vmul.f32 1.442695, %v1551_v54  ;;  %v1634_v54 = vld [vmem:[%s4240_s5 + $0x30] sm:$0x3f] }
 0x2f0   :  { %v1566_v58 = vmul.f32 1.442695, %v1552_v56 }
 0x2f1   :  { %3502 = vpow2.f32 %v1564_v57  ;;  %v1635_v57 = vld [vmem:[%s4240_s5 + $0x38] sm:$0x3f] }
 0x2f2   :  { %3504 = vpow2.f32 %v1566_v58 }
 0x2f3   :  { %v1535_v59 = vpop.xlane.xlu0 %1534 }
 0x2f4   :  { %v1553_v60 = vsub.f32 %v1133_v22, %v1535_v59 }
 0x2f5   :  { %v1538_v1 = vpop.xlane.xlu1 %1537 }
 0x2f6   :  { %v1568_v62 = vmul.f32 1.442695, %v1553_v60  ;;  %v1554_v3 = vsub.f32 %v1211_v25, %v1538_v1  ;;  %v1636_v60 = vld [vmem:[%s4240_s5 + $0x40] sm:$0x3f] }
 0x2f8   :  { %3506 = vpow2.f32 %v1568_v62  ;;  %v1570_v7 = vmul.f32 1.442695, %v1554_v3 }
 0x2f9   :  { %v4004_v2 = vpop.eup %3500  ;;  %v1544_v8 = vpop.xlane.xlu1 %1543 }
 0x2fa   :  { %v1584_v5 = vsel %vm1517_vm3, %v4004_v2, 0.0  ;;  %3508 = vpow2.f32 %v1570_v7  ;;  %v1556_v10 = vsub.f32 %v1401_v31, %v1544_v8 }
 0x2fb   :  { %v1541_v4 = vpop.xlane.xlu0 %1540  ;;  %1585 = vadd.xlane.f32.xlu1 %v1584_v5 }
 0x2fc   :  { %v1555_v6 = vsub.f32 %v1289_v27, %v1541_v4  ;;  %v1574_v13 = vmul.f32 1.442695, %v1556_v10 }
 0x2fe   :  { %v1572_v9 = vmul.f32 1.442695, %v1555_v6  ;;  %v4008_v14 = vpop.eup %3502 }
 0x2ff   :  { %v1547_v11 = vpop.xlane.xlu0 %1546  ;;  %v4010_v16 = vpop.eup %3504  ;;  %v1587_v17 = vsel %vm1517_vm3, %v4008_v14, 0.0 }
 0x300   :  { %3510 = vpow2.f32 %v1572_v9  ;;  %v1557_v12 = vsub.f32 %v1513_v33, %v1547_v11  ;;  %1588 = vadd.xlane.f32.xlu0 %v1587_v17  ;;  %v1590_v18 = vsel %vm1517_vm3, %v4010_v16, 0.0  ;;  %v1630_v33 = vld [vmem:[%s4240_s5 + $0x10] sm:$0x3f]  ;;  %v2439_v11 = vld [vmem:[%s4241_s7 + $0x8] sm:$0xff] }
 0x301   :  { %3512 = vpow2.f32 %v1574_v13  ;;  %1591 = vadd.xlane.f32.xlu1 %v1590_v18 }
 0x302   :  { %v1576_v15 = vmul.f32 1.442695, %v1557_v12  ;;  %v2438_v12 = vld [vmem:[%s4241_s7] sm:$0xff] }
 0x304   :  { %3514 = vpow2.f32 %v1576_v15 }
 0x305   :  { %v4016_v19 = vpop.eup %3506 }
 0x306   :  { %v1593_v20 = vsel %vm1517_vm3, %v4016_v19, 0.0 }
 0x307   :  { %1594 = vadd.xlane.f32.xlu0 %v1593_v20  ;;  %v4020_v21 = vpop.eup %3508 }
 0x308   :  { %v1596_v22 = vsel %vm1517_vm3, %v4020_v21, 0.0 }
 0x309   :  { %1597 = vadd.xlane.f32.xlu1 %v1596_v22 }
 0x30d   :  { %v4024_v23 = vpop.eup %3510 }
 0x30e   :  { %v1599_v24 = vsel %vm1517_vm3, %v4024_v23, 0.0  ;;  %v4028_v25 = vpop.eup %3512 }
 0x30f   :  { %1600 = vadd.xlane.f32.xlu0 %v1599_v24  ;;  %v1602_v26 = vsel %vm1517_vm3, %v4028_v25, 0.0 }
 0x310   :  { %1603 = vadd.xlane.f32.xlu1 %v1602_v26 }
 0x311   :  { %v4032_v27 = vpop.eup %3514  ;;  %v1580_v29 = vpop.xlane.xlu1 %1579 }
 0x312   :  { %v1605_v28 = vsel %vm1517_vm3, %v4032_v27, 0.0  ;;  %3516 = vrcp.f32 %v1580_v29  ;;  %v3274_v29 = vld [vmem:[%s4242_s6] ss:$0 sm:$0xff] }
 0x313   :  { %1606 = vadd.xlane.f32.xlu0 %v1605_v28 }
 0x315   :  { %v1583_v30 = vpop.xlane.xlu0 %1582 }
 0x316   :  { %3518 = vrcp.f32 %v1583_v30 }
 0x31f   :  { %v3517_v31 = vpop.eup %3516 }
 0x320   :  { %v1609_v32 = vmul.f32 %v3517_v31, %v3986_v44  ;;  %v1632_v44 = vld [vmem:[%s4240_s5 + $0x20] sm:$0x3f] }
 0x322   :  { %3400 = vmatmul.mubr.msk.f32.vlgmr.msra.gmra.mxu0 %vm1638_vm4, %v1609_v32 }
 0x323   :  { %3408 = vmatpush3.xpose.msk.msra.mxu0 %vm1638_vm4, %v1630_v33  ;;  %3409 = vmatprep.mubr.msk.f32.mxu0 %vm3550_vm1, %v3548_v0  ;;  %v3519_v34 = vpop.eup %3518 }
 0x324   :  { %3417 = vmatprep.subr.mxu0 %v3548_v0  ;;  %v1611_v35 = vmul.f32 %v3519_v34, %v3990_v46 }
 0x326   :  { %3405 = vmatmul.mubr.msk.f32.vlgmr.msra.gmra.mxu1 %vm1638_vm4, %v1611_v35 }
 0x327   :  { %3413 = vmatpush3.xpose.msk.msra.mxu1 %vm1638_vm4, %v1631_v37  ;;  %3414 = vmatprep.mubr.msk.f32.mxu1 %vm3550_vm1, %v3548_v0 }
 0x328   :  { %3422 = vmatprep.subr.mxu1 %v3548_v0 }
 0x384   :  { %v1586_v38 = vpop.xlane.xlu1 %1585 }
 0x385   :  { %3520 = vrcp.f32 %v1586_v38 }
 0x389   :  { %v1589_v39 = vpop.xlane.xlu0 %1588 }
 0x38a   :  { %3522 = vrcp.f32 %v1589_v39  ;;  %v1592_v40 = vpop.xlane.xlu1 %1591 }
 0x38b   :  { %3524 = vrcp.f32 %v1592_v40 }
 0x390   :  { %v1595_v41 = vpop.xlane.xlu0 %1594 }
 0x391   :  { %3526 = vrcp.f32 %v1595_v41 }
 0x392   :  { %v3521_v42 = vpop.eup %3520  ;;  %v1598_v45 = vpop.xlane.xlu1 %1597 }
 0x393   :  { %v1613_v43 = vmul.f32 %v3521_v42, %v4004_v2  ;;  %3528 = vrcp.f32 %v1598_v45  ;;  %v1637_v2 = vld [vmem:[%s4240_s5 + $0x48] sm:$0x3f] }
 0x395   :  { %3410 = vmatmul.mubr.msk.f32.vlgmr.msra.gmra.mxu0 %vm1638_vm4, %v1613_v43 }
 0x396   :  { %3418 = vmatpush3.xpose.msk.msra.mxu0 %vm1638_vm4, %v1632_v44  ;;  %3419 = vmatprep.mubr.msk.f32.mxu0 %vm3550_vm1, %v3548_v0 }
 0x397   :  { %3427 = vmatprep.subr.mxu0 %v3548_v0  ;;  %v3523_v48 = vpop.eup %3522 }
 0x398   :  { %v1601_v46 = vpop.xlane.xlu0 %1600  ;;  %v3525_v49 = vpop.eup %3524  ;;  %v1615_v51 = vmul.f32 %v3523_v48, %v4008_v14 }
 0x399   :  { %3530 = vrcp.f32 %v1601_v46  ;;  %v1604_v47 = vpop.xlane.xlu1 %1603  ;;  %v1617_v53 = vmul.f32 %v3525_v49, %v4010_v16 }
 0x39a   :  { %3532 = vrcp.f32 %v1604_v47  ;;  %3415 = vmatmul.mubr.msk.f32.vlgmr.msra.gmra.mxu1 %vm1638_vm4, %v1615_v51 }
 0x39b   :  { %3420 = vmatmul.mubr.msk.f32.vlgmr.msra.gmra.mxu0 %vm1638_vm4, %v1617_v53  ;;  %3423 = vmatpush3.xpose.msk.msra.mxu1 %vm1638_vm4, %v1633_v52 }
 0x39c   :  { %v1607_v50 = vpop.xlane.xlu0 %1606  ;;  %3424 = vmatprep.mubr.msk.f32.mxu1 %vm3550_vm1, %v3548_v0  ;;  %3432 = vmatprep.subr.mxu1 %v3548_v0 }
 0x39d   :  { %3534 = vrcp.f32 %v1607_v50  ;;  %3428 = vmatpush3.xpose.msk.msra.mxu0 %vm1638_vm4, %v1634_v54  ;;  %3429 = vmatprep.mubr.msk.f32.mxu0 %vm3550_vm1, %v3548_v0 }
 0x39e   :  { %v3527_v55 = vpop.eup %3526  ;;  %3437 = vmatprep.subr.mxu0 %v3548_v0 }
 0x39f   :  { %v1619_v56 = vmul.f32 %v3527_v55, %v4016_v19 }
 0x3a0   :  { %v3529_v58 = vpop.eup %3528 }
 0x3a1   :  { %3425 = vmatmul.mubr.msk.f32.vlgmr.msra.gmra.mxu1 %vm1638_vm4, %v1619_v56  ;;  %v1621_v59 = vmul.f32 %v3529_v58, %v4020_v21 }
 0x3a2   :  { %3433 = vmatpush3.xpose.msk.msra.mxu1 %vm1638_vm4, %v1635_v57  ;;  %3434 = vmatprep.mubr.msk.f32.mxu1 %vm3550_vm1, %v3548_v0 }
 0x3a3   :  { %3442 = vmatprep.subr.mxu1 %v3548_v0  ;;  %3430 = vmatmul.mubr.msk.f32.vlgmr.msra.gmra.mxu0 %vm1638_vm4, %v1621_v59 }
 0x3a4   :  { %3438 = vmatpush3.xpose.msk.msra.mxu0 %vm1638_vm4, %v1636_v60  ;;  %3439 = vmatprep.mubr.msk.f32.mxu0 %vm3550_vm1, %v3548_v0 }
 0x3a5   :  { %3447 = vmatprep.subr.mxu0 %v2439_v11 }
 0x3a6   :  { %v3531_v62 = vpop.eup %3530 }
 0x3a7   :  { %v1623_v1 = vmul.f32 %v3531_v62, %v4024_v23  ;;  %v3533_v3 = vpop.eup %3532 }
 0x3a8   :  { %v1625_v4 = vmul.f32 %v3533_v3, %v4028_v25 }
 0x3a9   :  { %3435 = vmatmul.mubr.msk.f32.vlgmr.msra.gmra.mxu1 %vm1638_vm4, %v1623_v1 }
 0x3aa   :  { %v3535_v5 = vpop.eup %3534  ;;  %3443 = vmatpush3.xpose.msk.msra.mxu1 %vm1638_vm4, %v1637_v2  ;;  %3444 = vmatprep.mubr.msk.f32.mxu1 %vm3550_vm1, %v3548_v0 }
 0x3ab   :  { %3440 = vmatmul.mubr.msk.f32.vlgmr.msra.gmra.mxu0 %vm1638_vm4, %v1625_v4  ;;  %v1627_v6 = vmul.f32 %v3535_v5, %v4032_v27  ;;  %3454 = vmatprep.subr.mxu1 %v3548_v0 }
 0x3ac   :  { %3451 = vmatprep.mubr.msk.f32.mxu0 %vm193_vm0, %v3857_v61  ;;  %3448 = vmatpush3.msra.mxu0 %v2439_v11 }
 0x3ad   :  { %3445 = vmatmul.mubr.msk.f32.vlgmr.msra.gmra.mxu1 %vm1638_vm4, %v1627_v6  ;;  %3449 = vmatprep.subr.mxu0 %v2438_v12 }
 0x3ae   :  { %3456 = vmatprep.mubr.msk.f32.mxu1 %vm3550_vm1, %v3548_v0  ;;  %3450 = vmatpush3.msra.mxu0 %v2438_v12 }
 0x3af   :  { %3452 = vmatmul.mubr.msk.f32.vlgmr.msra.gmra.mxu0 %vm193_vm0, %v3868_v63  ;;  %3459 = vmatprep.subr.mxu0 %v3548_v0 }
 0x3b0   :  { %3461 = vmatprep.mubr.msk.f32.mxu0 %vm3550_vm1, %v3548_v0 }
 0x3e2   :  { %v1711_v7 = vpop.f32.mrf.mxu0 }
 0x3e4   :  { %v3401_v8 = vpop.f32.mrf.mxu0 }
 0x3e6   :  { %v1787_v9 = vpop.f32.mrf.mxu1 }
 0x3e8   :  { %v3406_v10 = vpop.f32.mrf.mxu1 }
 0x455   :  { %v1863_v61 = vpop.f32.mrf.mxu0 }
 0x456   :  { %v2399_v20 = vadd.f32 %v1863_v61, %v1711_v7  ;;  %v3277_v61 = vld [vmem:[%s4243_s8] ss:$0 sm:$0xff] }
 0x457   :  { %v3411_v13 = vpop.f32.mrf.mxu0 }
 0x45a   :  { %v1939_v14 = vpop.f32.mrf.mxu1 }
 0x45b   :  { %v2015_v15 = vpop.f32.mrf.mxu0  ;;  %v2400_v22 = vadd.f32 %v1939_v14, %v1787_v9  ;;  %v2735_v14 = vstv %s4244_s11 }
 0x45c   :  { %v3416_v16 = vpop.f32.mrf.mxu1  ;;  %v2401_v23 = vadd.f32 %v2399_v20, %v2015_v15 }
 0x45d   :  { %v3421_v17 = vpop.f32.mrf.mxu0 }
 0x461   :  { %v2091_v18 = vpop.f32.mrf.mxu1 }
 0x462   :  { %v2402_v63 = vadd.f32 %v2400_v22, %v2091_v18 }
 0x463   :  { %v3426_v19 = vpop.f32.mrf.mxu1  ;;  %v2167_v21 = vpop.f32.mrf.mxu0 }
 0x464   :  { %v2403_v26 = vadd.f32 %v2401_v23, %v2167_v21 }
 0x465   :  { %v3431_v25 = vpop.f32.mrf.mxu0 }
 0x469   :  { %v2243_v24 = vpop.f32.mrf.mxu1 }
 0x46a   :  { %v2404_v30 = vadd.f32 %v2402_v63, %v2243_v24  ;;  %v3554_v63 = vmov 0  }
 0x46b   :  { %v3436_v27 = vpop.f32.mrf.mxu1  ;;  %v2319_v28 = vpop.f32.mrf.mxu0  ;;  %3492 = vset.pattern.permute.xlu1 %v3554_v63  ;;  %3493 = vset.pattern.permute.xlu0 %v3554_v63 }
 0x46c   :  { %v2405_v31 = vadd.f32 %v2403_v26, %v2319_v28 }
 0x46d   :  { %v2395_v32 = vpop.f32.mrf.mxu1  ;;  %v3441_v33 = vpop.f32.mrf.mxu0 }
 0x46e   :  { %v2406_v34 = vadd.f32 %v2404_v30, %v2395_v32  ;;  %v2414_v35 = vadd.f32 %v3274_v29, %v2405_v31 }
 0x46f   :  { %v3446_v37 = vpop.f32.mrf.mxu1  ;;  %v3453_v44 = vpop.f32.mrf.mxu0 }
 0x470   :  { %v2415_v38 = vadd.f32 %v3274_v29, %v2406_v34  ;;  %v2416_v39 = vsel %vm1517_vm3, %v2414_v35, -inf  ;;  %v2540_v52 = vrot.slane %v3453_v44, %v3793_v36  ;;  %v2786_v44 = vld [vmem:[%s4247_s9] sm:$0xff] }
 0x471   :  { %2417 = vmax.xlane.f32.xlu1 %v2416_v39  ;;  %v2506_v48 = vpop.f32.mrf.mxu0  ;;  %v2740_v39 = vld [vmem:[%s4245_s12] sm:$0x3f] }
 0x472   :  { %v2419_v40 = vsel %vm1517_vm3, %v2415_v38, -inf  ;;  %v2517_v49 = vcombine.high %v2506_v48, %v2506_v48  ;;  %v2524_v50 = vrot.slane %v2506_v48, %v3793_v36  ;;  %v2541_v59 = vcombine.high %v2540_v52, %v2540_v52 }
 0x473   :  { %2420 = vmax.xlane.f32.xlu0 %v2419_v40  ;;  %v2741_v40 = vld [vmem:[%s4246_s13] sm:$0x3f] }
 0x474   :  { %v2531_v51 = vrot.slane %v2517_v49, %v3793_v36  ;;  %v2532_v53 = vcombine.high %v2524_v50, %v2524_v50  ;;  %v2655_v1 = vrot.slane %v2541_v59, %v3793_v36 }
 0x476   :  { %v2533_v54 = vcombine.high %v2531_v51, %v2531_v51  ;;  %v2549_v60 = vcombine.low %v2524_v50, %v2532_v53  ;;  %v2563_v3 = vrot.slane %v2531_v51, %v3793_v36 }
 0x478   :  { %v2641_v62 = vcombine.low %v2533_v54, %v2540_v52  ;;  %v2556_v2 = vrot.slane %v2549_v60, %v3793_v36 }
 0x47a   :  { %v2648_v4 = vrot.slane %v2641_v62, %v3793_v36  ;;  %v2564_v5 = vcombine.low %v2556_v2, %v2563_v3 }
 0x47c   :  { %v2656_v6 = vcombine.low %v2648_v4, %v2655_v1  ;;  %3455 = vmatpush3.msk.msra.mxu1 %vm2568_vm5, %v2564_v5 }
 0x47e   :  { %3460 = vmatpush3.msk.msra.mxu0 %vm2568_vm5, %v2656_v6 }
 0x47f   :  { %3475 = vmatprep.subr.mxu0 %v3548_v0 }
 0x4fa   :  { %v2418_v41 = vpop.xlane.xlu1 %2417 }
 0x4fb   :  { %v2422_v42 = vsub.f32 %v2414_v35, %v2418_v41  ;;  %v2789_v41 = vld [vmem:[%s4247_s9 + $0x18] sm:$0xff] }
 0x4fc   :  { %v2421_v43 = vpop.xlane.xlu0 %2420  ;;  %3464 = vmatprep.subr.mxu1 %v2789_v41 }
 0x4fd   :  { %v2423_v45 = vsub.f32 %v2415_v38, %v2421_v43  ;;  %v2424_v46 = vmul.f32 1.442695, %v2422_v42  ;;  %v2788_v42 = vld [vmem:[%s4247_s9 + $0x10] sm:$0xff]  ;;  %v2787_v43 = vld [vmem:[%s4247_s9 + $0x8] sm:$0xff] }
 0x4ff   :  { %v2426_v47 = vmul.f32 1.442695, %v2423_v45  ;;  %3536 = vpow2.f32 %v2424_v46 }
 0x501   :  { %3538 = vpow2.f32 %v2426_v47 }
 0x50c   :  { %v3537_v55 = vpop.eup %3536 }
 0x50d   :  { %v2428_v56 = vsel %vm1517_vm3, %v3537_v55, 0.0 }
 0x50e   :  { %v3539_v57 = vpop.eup %3538  ;;  %2429 = vadd.xlane.f32.xlu1 %v2428_v56 }
 0x50f   :  { %v2431_v58 = vsel %vm1517_vm3, %v3539_v57, 0.0 }
 0x510   :  { %2432 = vadd.xlane.f32.xlu0 %v2431_v58 }
 0x597   :  { %v2430_v7 = vpop.xlane.xlu1 %2429 }
 0x598   :  { %3540 = vrcp.f32 %v2430_v7 }
 0x599   :  { %v2433_v8 = vpop.xlane.xlu0 %2432 }
 0x59a   :  { %3542 = vrcp.f32 %v2433_v8 }
 0x5a5   :  { %v3541_v9 = vpop.eup %3540 }
 0x5a6   :  { %v4143_v10 = vmul.f32 %v3541_v9, %v3537_v55 }
 0x5a7   :  { %v3543_v11 = vpop.eup %3542 }
 0x5a8   :  { %3457 = vmatmul.mubr.msk.f32.vlgmr.msra.gmra.mxu1 %vm1638_vm4, %v4143_v10  ;;  %v4147_v12 = vmul.f32 %v3543_v11, %v3539_v57 }
 0x5a9   :  { %3465 = vmatpush3.msra.mxu1 %v2789_v41 }
 0x5aa   :  { %3462 = vmatmul.mubr.msk.f32.vlgmr.msra.gmra.mxu0 %vm1638_vm4, %v4147_v12  ;;  %3466 = vmatprep.subr.mxu1 %v2788_v42 }
 0x5ab   :  { %3477 = vmatprep.mubr.msk.f32.mxu0 %vm3550_vm1, %v3548_v0  ;;  %3467 = vmatpush3.msra.mxu1 %v2788_v42 }
 0x5ac   :  { %3468 = vmatprep.subr.mxu1 %v2787_v43 }
 0x5ad   :  { %3469 = vmatpush3.msra.mxu1 %v2787_v43 }
 0x5ae   :  { %3470 = vmatprep.subr.mxu1 %v2786_v44 }
 0x5af   :  { %3471 = vmatpush3.msra.mxu1 %v2786_v44 }
 0x668   :  { %v2637_v13 = vpop.f32.mrf.mxu1 }
 0x669   :  { %v2638_v15 = vadd.f32 %v3277_v61, %v2637_v13 }
 0x66a   :  { %v2728_v16 = vpop.f32.mrf.mxu0  ;;  %v3458_v17 = vpop.f32.mrf.mxu1 }
 0x66b   :  { %v2736_v18 = vmul.f32 %v2735_v14, %v2638_v15  ;;  %v2729_v19 = vadd.f32 %v3277_v61, %v2728_v16  ;;  %vm2733_vm6 = vcmp.ge.f32.partialorder %v2638_v15, 0.0 }
 0x66c   :  { %v3463_v20 = vpop.f32.mrf.mxu0 }
 0x66d   :  { %v2737_v21 = vmul.f32 %v2735_v14, %v2729_v19  ;;  %v2738_v22 = vsel %vm2733_vm6, %v2638_v15, %v2736_v18  ;;  %vm2734_vm8 = vcmp.ge.f32.partialorder %v2729_v19, 0.0 }
 0x66e   :  { %v2743_v23 = vsel %vm2742_vm7, %v2738_v22, 0.0 }
 0x66f   :  { %2744 = vadd.xlane.f32.xlu1 %v2743_v23  ;;  %v2739_v24 = vsel %vm2734_vm8, %v2729_v19, %v2737_v21 }
 0x670   :  { %v2746_v25 = vsel %vm2742_vm7, %v2739_v24, 0.0 }
 0x671   :  { %2747 = vadd.xlane.f32.xlu0 %v2746_v25 }
 0x6f8   :  { %v2745_v26 = vpop.xlane.xlu1 %2744 }
 0x6f9   :  { %v2749_v27 = vsel %vm2568_vm5, %v2745_v26, 0.0 }
 0x6fa   :  { %v2748_v28 = vpop.xlane.xlu0 %2747 }
 0x6fb   :  { %v2750_v29 = vsel %vm2568_vm5, %v2748_v28, 0.0 }
 0x6fc   :  { %v2751_v30 = vadd.f32 %v2750_v29, %v2749_v27 }
 0x6fe   :  { %v2753_v31 = vmul.f32 0.015625, %v2751_v30 }
 0x700   :  { %v2754_v32 = vsub.f32 %v2738_v22, %v2753_v31  ;;  %v2755_v33 = vsub.f32 %v2739_v24, %v2753_v31 }
 0x702   :  { %v2757_v34 = vmul.f32 %v2755_v33, %v2755_v33  ;;  %v2756_v35 = vmul.f32 %v2754_v32, %v2754_v32 }
 0x704   :  { %v2761_v37 = vsel %vm2742_vm7, %v2757_v34, 0.0  ;;  %v2758_v38 = vsel %vm2742_vm7, %v2756_v35, 0.0 }
 0x705   :  { %2762 = vadd.xlane.f32.xlu0 %v2761_v37  ;;  %2759 = vadd.xlane.f32.xlu1 %v2758_v38 }
 0x716   :  { %2774 = vperm.xlu1 %3492, %v2740_v39  }
 0x71b   :  { %2781 = vperm.xlu0 %3493, %v2741_v40  }
 0x78e   :  { %v2763_v45 = vpop.xlane.xlu0 %2762  ;;  %v2760_v46 = vpop.xlane.xlu1 %2759 }
 0x78f   :  { %v2765_v47 = vsel %vm2568_vm5, %v2763_v45, 0.0  ;;  %v2764_v48 = vsel %vm2568_vm5, %v2760_v46, 0.0 }
 0x790   :  { %v2766_v49 = vadd.f32 %v2765_v47, %v2764_v48 }
 0x792   :  { %v2767_v50 = vmul.f32 0.015625, %v2766_v49  ;;  %v2775_v53 = vpop.permute.xlu1 %2774 }
 0x794   :  { %v2768_v51 = vadd.f32 1e-05, %v2767_v50 }
 0x796   :  { %3544 = vrsqrt.f32 %v2768_v51  ;;  %v2782_v56 = vpop.permute.xlu0 %2781  ;;  %v3138_v51 = vld [vmem:[%s4250_s14] sm:$0x3f] }
 0x7a3   :  { %v3545_v52 = vpop.eup %3544 }
 0x7a4   :  { %v2770_v54 = vmul.f32 %v3545_v52, %v2754_v32  ;;  %v2771_v55 = vmul.f32 %v3545_v52, %v2755_v33 }
 0x7a6   :  { %v2777_v57 = vmul.f32 %v2775_v53, %v2770_v54  ;;  %v2778_v58 = vmul.f32 %v2775_v53, %v2771_v55 }
 0x7a8   :  { %v2784_v59 = vadd.f32 %v2782_v56, %v2777_v57  ;;  %v2785_v60 = vadd.f32 %v2782_v56, %v2778_v58 }
 0x7aa   :  { %v2792_v62 = vcombine.high %v2784_v59, %v2784_v59  ;;  %v2799_v1 = vrot.slane %v2784_v59, %v3793_v36  ;;  %v2808_v2 = vcombine.high %v2785_v60, %v2785_v60  ;;  %v2815_v3 = vrot.slane %v2785_v60, %v3793_v36 }
 0x7ac   :  { %v2806_v4 = vrot.slane %v2792_v62, %v3793_v36  ;;  %v2807_v5 = vcombine.high %v2799_v1, %v2799_v1  ;;  %v2822_v6 = vrot.slane %v2808_v2, %v3793_v36  ;;  %v2823_v7 = vcombine.high %v2815_v3, %v2815_v3 }
 0x7ae   :  { %v2824_v8 = vcombine.low %v2799_v1, %v2807_v5  ;;  %v2825_v9 = vcombine.low %v2806_v4, %v2815_v3  ;;  %v2841_v11 = vcombine.low %v2823_v7, %v2822_v6 }
 0x7b0   :  { %v2832_v61 = vrot.slane %v2824_v8, %v3793_v36  ;;  %v2839_v13 = vrot.slane %v2825_v9, %v3793_v36  ;;  %v2848_v15 = vrot.slane %v2841_v11, %v3793_v36 }
 0x7b2   :  { %v2840_v14 = vcombine.low %v2832_v61, %v2839_v13 }
 0x7b4   :  { %3472 = vmatprep.mubr.msk.f32.mxu1 %vm644_vm2, %v2840_v14 }
 0x7b5   :  { %3473 = vmatmul.mubr.msk.f32.vlgmr.msra.gmra.mxu1 %vm644_vm2, %v2848_v15 }
 0x875   :  { %v3474_v16 = vpop.f32.mrf.mxu1 }
 0x876   :  { %v2953_v18 = vrot.slane %v3474_v16, %v3793_v36 }
 0x877   :  { %v2919_v17 = vpop.f32.mrf.mxu1 }
 0x878   :  { %v2930_v19 = vcombine.high %v2919_v17, %v2919_v17  ;;  %v2937_v20 = vrot.slane %v2919_v17, %v3793_v36  ;;  %v2954_v23 = vcombine.high %v2953_v18, %v2953_v18 }
 0x87a   :  { %v2944_v21 = vrot.slane %v2930_v19, %v3793_v36  ;;  %v2945_v22 = vcombine.high %v2937_v20, %v2937_v20  ;;  %v3064_v28 = vrot.slane %v2954_v23, %v3793_v36 }
 0x87c   :  { %v2946_v24 = vcombine.high %v2944_v21, %v2944_v21  ;;  %v2962_v25 = vcombine.low %v2937_v20, %v2945_v22  ;;  %v2976_v26 = vrot.slane %v2944_v21, %v3793_v36 }
 0x87e   :  { %v2969_v63 = vrot.slane %v2962_v25, %v3793_v36  ;;  %v3050_v27 = vcombine.low %v2946_v24, %v2953_v18 }
 0x880   :  { %v2977_v29 = vcombine.low %v2969_v63, %v2976_v26  ;;  %v3057_v30 = vrot.slane %v3050_v27, %v3793_v36  ;;  %v3284_v36 = vld [vmem:[%s4248_s10] ss:$0 sm:$0xff] }
 0x882   :  { %v3065_v31 = vcombine.low %v3057_v30, %v3064_v28  ;;  %3476 = vmatpush3.msk.msra.mxu0 %vm2568_vm5, %v2977_v29 }
 0x883   :  { %3478 = vmatmul.mubr.msk.f32.vlgmr.msra.gmra.mxu0 %vm1638_vm4, %v4143_v10  ;;  %3480 = vmatprep.subr.mxu0 %v3548_v0 }
 0x884   :  { %3481 = vmatpush3.msk.msra.mxu0 %vm2568_vm5, %v3065_v31  ;;  %3482 = vmatprep.mubr.msk.f32.mxu0 %vm3550_vm1, %v3548_v0  ;;  %v3139_v0 = vld [vmem:[%s4249_s15] sm:$0x3f] }
 0x887   :  { %3483 = vmatmul.mubr.msk.f32.vlgmr.msra.gmra.mxu0 %vm1638_vm4, %v4147_v12 }
 0x943   :  { %v3046_v32 = vpop.f32.mrf.mxu0 }
 0x944   :  { %v3047_v33 = vadd.f32 %v3284_v36, %v3046_v32 }
 0x945   :  { %v3479_v34 = vpop.f32.mrf.mxu0 }
 0x946   :  { %v3141_v10 = vsel %vm3140_vm9, %v3047_v33, 0.0 }
 0x947   :  { %3142 = vadd.xlane.f32.xlu1 %v3141_v10  ;;  %v3134_v35 = vpop.f32.mrf.mxu0 }
 0x948   :  { %v3135_v37 = vadd.f32 %v3284_v36, %v3134_v35 }
 0x949   :  { %v3484_v38 = vpop.f32.mrf.mxu0 }
 0x94a   :  { %v3144_v39 = vsel %vm3140_vm9, %v3135_v37, 0.0 }
 0x94b   :  { %3145 = vadd.xlane.f32.xlu0 %v3144_v39 }
 0x961   :  { %3179 = vperm.xlu0 %3493, %v3139_v0  }
 0x9d0   :  { %v3143_v12 = vpop.xlane.xlu1 %3142 }
 0x9d1   :  { %v3147_v41 = vsel %vm2568_vm5, %v3143_v12, 0.0 }
 0x9d4   :  { %v3146_v40 = vpop.xlane.xlu0 %3145 }
 0x9d5   :  { %v3148_v42 = vsel %vm2568_vm5, %v3146_v40, 0.0 }
 0x9d6   :  { %v3149_v43 = vadd.f32 %v3148_v42, %v3147_v41 }
 0x9d8   :  { %v3151_v44 = vmul.f32 0.0625, %v3149_v43 }
 0x9da   :  { %v3152_v45 = vsub.f32 %v3047_v33, %v3151_v44  ;;  %v3153_v46 = vsub.f32 %v3135_v37, %v3151_v44 }
 0x9dc   :  { %v3154_v47 = vmul.f32 %v3152_v45, %v3152_v45  ;;  %v3155_v49 = vmul.f32 %v3153_v46, %v3153_v46  ;;  %v3180_v4 = vpop.permute.xlu0 %3179 }
 0x9de   :  { %v3156_v48 = vsel %vm3140_vm9, %v3154_v47, 0.0  ;;  %v3159_v50 = vsel %vm3140_vm9, %v3155_v49, 0.0 }
 0x9df   :  { %3157 = vadd.xlane.f32.xlu1 %v3156_v48 }
 0x9e3   :  { %3160 = vadd.xlane.f32.xlu1 %v3159_v50 }
 0x9f4   :  { %3172 = vperm.xlu1 %3492, %v3138_v51  }
 0xa68   :  { %v3158_v52 = vpop.xlane.xlu1 %3157 }
 0xa69   :  { %v3162_v54 = vsel %vm2568_vm5, %v3158_v52, 0.0 }
 0xa6c   :  { %v3161_v53 = vpop.xlane.xlu1 %3160 }
 0xa6d   :  { %v3163_v55 = vsel %vm2568_vm5, %v3161_v53, 0.0 }
 0xa6e   :  { %v3164_v56 = vadd.f32 %v3163_v55, %v3162_v54 }
 0xa70   :  { %v3165_v57 = vmul.f32 0.0625, %v3164_v56  ;;  %v3173_v1 = vpop.permute.xlu1 %3172 }
 0xa72   :  { %v3166_v58 = vadd.f32 1e-05, %v3165_v57 }
 0xa74   :  { %3546 = vrsqrt.f32 %v3166_v58 }
 0xa81   :  { %v3547_v59 = vpop.eup %3546 }
 0xa82   :  { %v3168_v60 = vmul.f32 %v3547_v59, %v3152_v45  ;;  %v3169_v62 = vmul.f32 %v3547_v59, %v3153_v46 }
 0xa84   :  { %v3175_v2 = vmul.f32 %v3173_v1, %v3168_v60  ;;  %v3176_v3 = vmul.f32 %v3173_v1, %v3169_v62 }
 0xa86   :  { %v3182_v5 = vadd.f32 %v3180_v4, %v3175_v2  ;;  %v3183_v6 = vadd.f32 %v3180_v4, %v3176_v3 }
 0xa88   :  { %3184 = vst.msk [vmem:[%s4251_s16] sm:$0x3f] %vm3140_vm9, %v3182_v5  ;;  %3185 = vst.msk [vmem:[%s4251_s16 + $0x8] sm:$0x3f] %vm3140_vm9, %v3183_v6 }

</bundles_post_ra>
